<compile_context>
chip_gen: v6e
topology: v6e:2x2x1
jax: 0.10.0
libtpu: 0.0.40
codegen_flags: <defaults>
</compile_context>

<pallas_src>
import functools

import jax
import jax.numpy as jnp
from jax.experimental import pallas as pl
from jax.experimental.pallas import tpu as pltpu

EPS = 1e-5  # torch BatchNorm1d default eps


# ----------------------------- Pallas kernel --------------------------------
def mom_kernel(xs_ref, wre_ref, bre_ref, re_sc_ref, re_sh_ref,
               wq_ref, wk_ref, sel_ref,
               wexp_ref, bexp_ref, exp_sc_ref, exp_sh_ref,
               out_ref, *, scale, approx_recip):
    nmod, tb, d = xs_ref.shape

    xs = xs_ref[...]                                    # (7, TB, D) compute dtype
    cdt = xs.dtype

    # --- gating network: sum_j x_j @ Wre_j  -> QuickGELU -> folded BN -------
    h = jnp.dot(xs[0], wre_ref[0], preferred_element_type=jnp.float32)
    for j in range(1, nmod):
        h = h + jnp.dot(xs[j], wre_ref[j], preferred_element_type=jnp.float32)
    h = h + bre_ref[...]
    h = h * jax.nn.sigmoid(1.702 * h)                   # QuickGELU (f32)
    h = h * re_sc_ref[...] + re_sh_ref[...]             # BN(eval), folded

    q = jnp.dot(h.astype(cdt), wq_ref[...],
                preferred_element_type=jnp.float32)     # (TB, D) f32

    # --- fused K projection for all modalities: one (7*TB, D)@(D, D) matmul -
    xs_flat = xs.reshape(nmod * tb, d)                  # leading-dim flatten
    k_all = jnp.dot(xs_flat, wk_ref[...],
                    preferred_element_type=jnp.float32).reshape(nmod, tb, d)

    # --- per-head attention logits, replicated across each head's hd lanes --
    # sel is the 0/1 head-block matrix, so the output is the per-head dot
    # product already broadcast to D lanes.  On the bf16 path qk and sel are
    # bf16 (MXU-native); on the f32 path this stays exact.
    qk = (q[None, :, :] * k_all).reshape(nmod * tb, d).astype(sel_ref.dtype)
    logits = (jnp.dot(qk, sel_ref[...], preferred_element_type=jnp.float32)
              * scale).reshape(nmod, tb, d)

    # --- softmax over the 7 modalities (lane-dense, VPU/EUP) -----------------
    m = jnp.max(logits, axis=0, keepdims=True)
    e = jnp.exp(logits - m)
    denom = jnp.sum(e, axis=0, keepdims=True)
    gates = e * pl.reciprocal(denom, approx=approx_recip)   # (7, TB, D)

    # --- experts: block-diag linear -> QuickGELU -> folded BN -> gate --------
    # Direct per-modality stores (lane-dense, unmasked when D % 128 == 0):
    # no (TB, 7D) concatenate temp, fewer simultaneously-live slabs.
    for j in range(nmod):
        y = jnp.dot(xs[j], wexp_ref[j],
                    preferred_element_type=jnp.float32) + bexp_ref[j]
        y = y * jax.nn.sigmoid(1.702 * y)
        y = y * exp_sc_ref[j] + exp_sh_ref[j]
        out_ref[:, j * d:(j + 1) * d] = (y * gates[j]).astype(out_ref.dtype)


# --------------------------- sizing helpers ----------------------------------
def _round_up(x, m):
    return ((x + m - 1) // m) * m


def _vmem_estimate_bytes(D, nmod, tile_b, bytes_c, bytes_out):
    # resident weights, single-buffered (pl.Buffered(1)): wre, wexp, wq, wk, sel
    weights = (2 * nmod + 3) * D * D * bytes_c
    weights += (3 + 3 * nmod) * D * 4                    # folded-BN vectors / biases
    # streamed activations, double-buffered by default
    acts = 2 * nmod * tile_b * D * bytes_c + 2 * tile_b * nmod * D * bytes_out
    # in-kernel f32 intermediates (k_all, qk/logits, e/gates, h, q, expert y)
    interm = (4 * nmod * tile_b * D + 4 * tile_b * D) * 4
    return weights + acts + interm


# ------------------------------ JAX wrapper ----------------------------------
def mom_pallas(x_list, p, head, *, tile_b=256,
               compute_dtype=jnp.bfloat16, out_dtype=jnp.float32):
    if x_list[0].ndim == 1:                       # mirror the torch unsqueeze
        x_list = [x[None, :] for x in x_list]
    nmod = len(x_list)
    B, D = x_list[0].shape
    assert D % head == 0
    hd = D // head

    bytes_c = jnp.dtype(compute_dtype).itemsize
    bytes_out = jnp.dtype(out_dtype).itemsize
    # exact divide on the f32 validation path; EUP vrcp on the bf16 path
    approx_recip = jnp.dtype(compute_dtype) != jnp.dtype(jnp.float32)

    # ---- parameter packing (one-time glue, no hot-path compute) -------------
    wre = p["W_re"].T.reshape(nmod, D, D).astype(compute_dtype)    # (7, D, D)
    bre = p["b_re"].reshape(1, D).astype(jnp.float32)
    re_sc = (p["bn_re_gamma"] / jnp.sqrt(p["bn_re_var"] + EPS)).reshape(1, D)
    re_sh = (p["bn_re_beta"] - p["bn_re_mean"] * re_sc[0]).reshape(1, D)
    re_sc = re_sc.astype(jnp.float32)
    re_sh = re_sh.astype(jnp.float32)

    wq = p["W_q"].T.astype(compute_dtype)
    wk = p["W_k"].T.astype(compute_dtype)

    # (D, D) 0/1 head-block selector: sel[a, b] = 1 iff a, b in same head.
    head_idx = jnp.arange(D) // hd
    sel2 = (head_idx[:, None] == head_idx[None, :]).astype(compute_dtype)

    # Block-diagonal expert weights, one (D, D) matrix per modality.
    # TODO(synk): for hd >= 128, switch to a head-batched (hd, hd) contraction
    # to avoid the factor-of-`head` MXU FLOP / weight-VMEM waste of block-diag.
    wexp = jnp.zeros((nmod, D, D), jnp.float32)
    bexp = jnp.zeros((nmod, 1, D), jnp.float32)
    exp_sc = jnp.zeros((nmod, 1, D), jnp.float32)
    exp_sh = jnp.zeros((nmod, 1, D), jnp.float32)
    for j in range(nmod):
        for i in range(head):
            sl = slice(i * hd, (i + 1) * hd)
            wexp = wexp.at[j, sl, sl].set(p["W_e"][i, j].T)
            bexp = bexp.at[j, 0, sl].set(p["b_e"][i, j])
            sc = p["bn_e_gamma"][i, j] / jnp.sqrt(p["bn_e_var"][i, j] + EPS)
            exp_sc = exp_sc.at[j, 0, sl].set(sc)
            exp_sh = exp_sh.at[j, 0, sl].set(p["bn_e_beta"][i, j]
                                             - p["bn_e_mean"][i, j] * sc)
    wexp = wexp.astype(compute_dtype)

    # ---- VMEM budget, tile selection, explicit scoped-VMEM limit ------------
    try:
        phys_vmem = int(getattr(pltpu.get_tpu_info(), "vmem_capacity_bytes",
                                64 << 20))
    except Exception:  # pragma: no cover - conservative fallback (v7x size)
        phys_vmem = 64 << 20
    budget = phys_vmem * 3 // 4

    tile_b = _round_up(max(8, min(tile_b, B)), 8)
    # v7x megacore: ensure >= 2 grid steps so ("parallel",) uses both TCs.
    if B > 8 and pl.cdiv(_round_up(B, 8), tile_b) < 2:
        tile_b = _round_up(max(8, (B + 1) // 2), 8)
    # shrink the batch tile until weights + tiles + intermediates fit VMEM.
    while tile_b > 8 and _vmem_estimate_bytes(D, nmod, tile_b, bytes_c,
                                              bytes_out) > budget:
        tile_b = _round_up(max(8, tile_b // 2), 8)

    est = _vmem_estimate_bytes(D, nmod, tile_b, bytes_c, bytes_out)
    vmem_limit = int(min(phys_vmem * 9 // 10, max(2 * est, 32 << 20)))

    # ---- activations: modality-major stack, batch padded to the tile --------
    xs = jnp.stack(x_list, axis=0).astype(compute_dtype)            # (7, B, D)
    Bp = _round_up(B, tile_b)
    if Bp != B:
        xs = jnp.pad(xs, ((0, 0), (0, Bp - B), (0, 0)))

    resident = pl.Buffered(1)            # constant block index -> single buffer
    const3 = lambda b: (0, 0, 0)
    const2 = lambda b: (0, 0)
    in_specs = [
        pl.BlockSpec((nmod, tile_b, D), lambda b: (0, b, 0)),               # xs
        pl.BlockSpec((nmod, D, D), const3, pipeline_mode=resident),         # wre
        pl.BlockSpec((1, D), const2, pipeline_mode=resident),               # bre
        pl.BlockSpec((1, D), const2, pipeline_mode=resident),               # re_sc
        pl.BlockSpec((1, D), const2, pipeline_mode=resident),               # re_sh
        pl.BlockSpec((D, D), const2, pipeline_mode=resident),               # wq
        pl.BlockSpec((D, D), const2, pipeline_mode=resident),               # wk
        pl.BlockSpec((D, D), const2, pipeline_mode=resident),               # sel2
        pl.BlockSpec((nmod, D, D), const3, pipeline_mode=resident),         # wexp
        pl.BlockSpec((nmod, 1, D), const3, pipeline_mode=resident),         # bexp
        pl.BlockSpec((nmod, 1, D), const3, pipeline_mode=resident),         # exp_sc
        pl.BlockSpec((nmod, 1, D), const3, pipeline_mode=resident),         # exp_sh
    ]

    out = pl.pallas_call(
        functools.partial(mom_kernel, scale=float(hd) ** -0.5,
                          approx_recip=approx_recip),
        out_shape=jax.ShapeDtypeStruct((Bp, nmod * D), out_dtype),
        grid=(pl.cdiv(Bp, tile_b),),
        in_specs=in_specs,
        out_specs=pl.BlockSpec((tile_b, nmod * D), lambda b: (b, 0)),
        compiler_params=pltpu.CompilerParams(
            dimension_semantics=("parallel",),
            vmem_limit_bytes=vmem_limit),
    )(xs, wre, bre, re_sc, re_sh, wq, wk, sel2, wexp, bexp, exp_sc, exp_sh)

    return out[:B]


# --------------------------- pure-JAX reference -------------------------------
def mom_reference(x_list, p, head):
    B, D = x_list[0].shape
    hd = D // head
    nmod = len(x_list)

    query = jnp.concatenate(x_list, -1)                           # (B, 7D)
    key = jnp.stack(x_list, 1)                                    # (B, 7, D)

    h = query @ p["W_re"].T + p["b_re"]
    h = h * jax.nn.sigmoid(1.702 * h)
    h = ((h - p["bn_re_mean"]) / jnp.sqrt(p["bn_re_var"] + EPS)
         * p["bn_re_gamma"] + p["bn_re_beta"])
    q = h @ p["W_q"].T                                            # (B, D)
    k = key @ p["W_k"].T                                          # (B, 7, D)

    qh = q.reshape(B, head, hd)
    kh = k.reshape(B, nmod, head, hd).transpose(0, 2, 1, 3)       # (B, H, 7, hd)
    attn = jnp.einsum("bhd,bhjd->bhj", qh, kh) * hd ** -0.5
    gates = jax.nn.softmax(attn, axis=-1)                         # (B, H, 7)

    per_head = []
    for i in range(head):
        outs = []
        for j in range(nmod):
            xc = x_list[j][:, i * hd:(i + 1) * hd]
            y = xc @ p["W_e"][i, j].T + p["b_e"][i, j]
            y = y * jax.nn.sigmoid(1.702 * y)
            y = ((y - p["bn_e_mean"][i, j]) / jnp.sqrt(p["bn_e_var"][i, j] + EPS)
                 * p["bn_e_gamma"][i, j] + p["bn_e_beta"][i, j])
            outs.append(y)
        eo = jnp.stack(outs, axis=1)                              # (B, 7, hd)
        eo = eo * gates[:, i, :, None]
        per_head.append(eo)
    out = jnp.concatenate(per_head, axis=-1)                      # (B, 7, D)
    return out.reshape(B, nmod * D)


# ------------------------------ param init ------------------------------------
def init_params(key, D, head, nmod=7, dtype=jnp.float32):
    hd = D // head
    ks = jax.random.split(key, 16)
    p = {
        "W_re": 0.05 * jax.random.normal(ks[0], (D, nmod * D), dtype),
        "b_re": 0.05 * jax.random.normal(ks[1], (D,), dtype),
        "bn_re_gamma": 1.0 + 0.1 * jax.random.normal(ks[2], (D,), dtype),
        "bn_re_beta": 0.1 * jax.random.normal(ks[3], (D,), dtype),
        "bn_re_mean": 0.1 * jax.random.normal(ks[4], (D,), dtype),
        "bn_re_var": 1.0 + 0.5 * jax.random.uniform(ks[5], (D,), dtype),
        "W_q": 0.05 * jax.random.normal(ks[6], (D, D), dtype),
        "W_k": 0.05 * jax.random.normal(ks[7], (D, D), dtype),
        "W_e": 0.1 * jax.random.normal(ks[8], (head, nmod, hd, hd), dtype),
        "b_e": 0.05 * jax.random.normal(ks[9], (head, nmod, hd), dtype),
        "bn_e_gamma": 1.0 + 0.1 * jax.random.normal(ks[10], (head, nmod, hd), dtype),
        "bn_e_beta": 0.1 * jax.random.normal(ks[11], (head, nmod, hd), dtype),
        "bn_e_mean": 0.1 * jax.random.normal(ks[12], (head, nmod, hd), dtype),
        "bn_e_var": 1.0 + 0.5 * jax.random.uniform(ks[13], (head, nmod, hd), dtype),
    }
    return p


# --------------------------------- main ----------------------------------------
if __name__ == "__main__":
    B = 16            # small demo batch; auto-tiling gives a 2-step parallel grid
    INPUT_DIM = 32    # real deployments: use D a multiple of 128 (lane-dense)
    HEAD = 4
    NMOD = 7          # num_experts must be 7 (== number of modality inputs)

    key = jax.random.PRNGKey(0)
    k_params, k_x = jax.random.split(key)
    params = init_params(k_params, INPUT_DIM, HEAD, NMOD)

    xkeys = jax.random.split(k_x, NMOD)
    x_list = [jax.random.normal(xkeys[j], (B, INPUT_DIM), jnp.float32)
              for j in range(NMOD)]

    ref = jax.block_until_ready(mom_reference(x_list, params, HEAD))

    # Default bf16 MXU path (f32 accumulation + f32 epilogue); loose tolerance
    # because inputs/weights are quantized to bf16 before the matmuls.
    out_bf16 = jax.block_until_ready(mom_pallas(x_list, params, HEAD))
    assert out_bf16.shape == (B, NMOD * INPUT_DIM), out_bf16.shape
    assert jnp.allclose(out_bf16.astype(jnp.float32), ref, atol=5e-2, rtol=5e-2), (
        float(jnp.max(jnp.abs(out_bf16.astype(jnp.float32) - ref))))

    # Exact f32 validation path (strict tolerance).
    out_f32 = jax.block_until_ready(
        mom_pallas(x_list, params, HEAD, compute_dtype=jnp.float32))
    assert jnp.allclose(out_f32, ref, atol=1e-4, rtol=1e-4), (
        float(jnp.max(jnp.abs(out_f32 - ref))))

    # TODO(synk): training-mode branch (batch-stat BatchNorm + (outputs, loss)
    # return) is not implemented; kernel covers the eval-mode forward pass.
    print("KERNEL_OK")
</pallas_src>

<mosaic_0001>
module attributes {stable_mosaic.version = 11 : i64} {
  func.func @mom_kernel(%arg0: i32, %arg1: memref<7x8x32xbf16, #tpu.memory_space<vmem>>, %arg2: memref<7x32x32xbf16, #tpu.memory_space<vmem>>, %arg3: memref<1x32xf32, #tpu.memory_space<vmem>>, %arg4: memref<1x32xf32, #tpu.memory_space<vmem>>, %arg5: memref<1x32xf32, #tpu.memory_space<vmem>>, %arg6: memref<32x32xbf16, #tpu.memory_space<vmem>>, %arg7: memref<32x32xbf16, #tpu.memory_space<vmem>>, %arg8: memref<32x32xbf16, #tpu.memory_space<vmem>>, %arg9: memref<7x32x32xbf16, #tpu.memory_space<vmem>>, %arg10: memref<7x1x32xf32, #tpu.memory_space<vmem>>, %arg11: memref<7x1x32xf32, #tpu.memory_space<vmem>>, %arg12: memref<7x1x32xf32, #tpu.memory_space<vmem>>, %arg13: memref<8x224xf32, #tpu.memory_space<vmem>>) attributes {dimension_semantics = [#tpu.dimension_semantics<parallel>], iteration_bounds = array<i64: 2>, scalar_prefetch = 0 : i64, scratch_operands = 0 : i64, tpu.core_type = #tpu.core_type<tc>, window_params = [{transform_indices = @transform_0, window_bounds = array<i64: 7, 8, 32>}, {pipeline_mode = #tpu.pipeline_mode<synchronous>, transform_indices = @transform_1, window_bounds = array<i64: 7, 32, 32>}, {pipeline_mode = #tpu.pipeline_mode<synchronous>, transform_indices = @transform_2, window_bounds = array<i64: 1, 32>}, {pipeline_mode = #tpu.pipeline_mode<synchronous>, transform_indices = @transform_3, window_bounds = array<i64: 1, 32>}, {pipeline_mode = #tpu.pipeline_mode<synchronous>, transform_indices = @transform_4, window_bounds = array<i64: 1, 32>}, {pipeline_mode = #tpu.pipeline_mode<synchronous>, transform_indices = @transform_5, window_bounds = array<i64: 32, 32>}, {pipeline_mode = #tpu.pipeline_mode<synchronous>, transform_indices = @transform_6, window_bounds = array<i64: 32, 32>}, {pipeline_mode = #tpu.pipeline_mode<synchronous>, transform_indices = @transform_7, window_bounds = array<i64: 32, 32>}, {pipeline_mode = #tpu.pipeline_mode<synchronous>, transform_indices = @transform_8, window_bounds = array<i64: 7, 32, 32>}, {pipeline_mode = #tpu.pipeline_mode<synchronous>, transform_indices = @transform_9, window_bounds = array<i64: 7, 1, 32>}, {pipeline_mode = #tpu.pipeline_mode<synchronous>, transform_indices = @transform_10, window_bounds = array<i64: 7, 1, 32>}, {pipeline_mode = #tpu.pipeline_mode<synchronous>, transform_indices = @transform_11, window_bounds = array<i64: 7, 1, 32>}, {transform_indices = @transform_12, window_bounds = array<i64: 8, 224>}]} {
    %c0 = arith.constant 0 : index
    %c0_0 = arith.constant 0 : index
    %c0_1 = arith.constant 0 : index
    %0 = vector.load %arg1[%c0, %c0_0, %c0_1] : memref<7x8x32xbf16, #tpu.memory_space<vmem>>, vector<7x8x32xbf16>
    %1 = vector.extract_strided_slice %0 {offsets = [0, 0, 0], sizes = [1, 8, 32], strides = [1, 1, 1]} : vector<7x8x32xbf16> to vector<1x8x32xbf16>
    %2 = vector.shape_cast %1 : vector<1x8x32xbf16> to vector<8x32xbf16>
    %c0_2 = arith.constant 0 : index
    %c0_3 = arith.constant 0 : index
    %c0_4 = arith.constant 0 : index
    %3 = vector.load %arg2[%c0_2, %c0_3, %c0_4] : memref<7x32x32xbf16, #tpu.memory_space<vmem>>, vector<1x32x32xbf16>
    %4 = vector.shape_cast %3 : vector<1x32x32xbf16> to vector<32x32xbf16>
    %cst = arith.constant dense<0.000000e+00> : vector<8x32xf32>
    %5 = tpu.matmul %2, %4, %cst {dimension_numbers = #tpu.dot_dimension_numbers<[1], [0], [0], [1], [0, 0, 1, 1], [], []>} : vector<8x32xbf16>, vector<32x32xbf16>, vector<8x32xf32> -> vector<8x32xf32>
    %6 = vector.extract_strided_slice %0 {offsets = [1, 0, 0], sizes = [1, 8, 32], strides = [1, 1, 1]} : vector<7x8x32xbf16> to vector<1x8x32xbf16>
    %7 = vector.shape_cast %6 : vector<1x8x32xbf16> to vector<8x32xbf16>
    %c1 = arith.constant 1 : index
    %c0_5 = arith.constant 0 : index
    %c0_6 = arith.constant 0 : index
    %8 = vector.load %arg2[%c1, %c0_5, %c0_6] : memref<7x32x32xbf16, #tpu.memory_space<vmem>>, vector<1x32x32xbf16>
    %9 = vector.shape_cast %8 : vector<1x32x32xbf16> to vector<32x32xbf16>
    %cst_7 = arith.constant dense<0.000000e+00> : vector<8x32xf32>
    %10 = tpu.matmul %7, %9, %cst_7 {dimension_numbers = #tpu.dot_dimension_numbers<[1], [0], [0], [1], [0, 0, 1, 1], [], []>} : vector<8x32xbf16>, vector<32x32xbf16>, vector<8x32xf32> -> vector<8x32xf32>
    %11 = arith.addf %5, %10 : vector<8x32xf32>
    %12 = vector.extract_strided_slice %0 {offsets = [2, 0, 0], sizes = [1, 8, 32], strides = [1, 1, 1]} : vector<7x8x32xbf16> to vector<1x8x32xbf16>
    %13 = vector.shape_cast %12 : vector<1x8x32xbf16> to vector<8x32xbf16>
    %c2 = arith.constant 2 : index
    %c0_8 = arith.constant 0 : index
    %c0_9 = arith.constant 0 : index
    %14 = vector.load %arg2[%c2, %c0_8, %c0_9] : memref<7x32x32xbf16, #tpu.memory_space<vmem>>, vector<1x32x32xbf16>
    %15 = vector.shape_cast %14 : vector<1x32x32xbf16> to vector<32x32xbf16>
    %cst_10 = arith.constant dense<0.000000e+00> : vector<8x32xf32>
    %16 = tpu.matmul %13, %15, %cst_10 {dimension_numbers = #tpu.dot_dimension_numbers<[1], [0], [0], [1], [0, 0, 1, 1], [], []>} : vector<8x32xbf16>, vector<32x32xbf16>, vector<8x32xf32> -> vector<8x32xf32>
    %17 = arith.addf %11, %16 : vector<8x32xf32>
    %18 = vector.extract_strided_slice %0 {offsets = [3, 0, 0], sizes = [1, 8, 32], strides = [1, 1, 1]} : vector<7x8x32xbf16> to vector<1x8x32xbf16>
    %19 = vector.shape_cast %18 : vector<1x8x32xbf16> to vector<8x32xbf16>
    %c3 = arith.constant 3 : index
    %c0_11 = arith.constant 0 : index
    %c0_12 = arith.constant 0 : index
    %20 = vector.load %arg2[%c3, %c0_11, %c0_12] : memref<7x32x32xbf16, #tpu.memory_space<vmem>>, vector<1x32x32xbf16>
    %21 = vector.shape_cast %20 : vector<1x32x32xbf16> to vector<32x32xbf16>
    %cst_13 = arith.constant dense<0.000000e+00> : vector<8x32xf32>
    %22 = tpu.matmul %19, %21, %cst_13 {dimension_numbers = #tpu.dot_dimension_numbers<[1], [0], [0], [1], [0, 0, 1, 1], [], []>} : vector<8x32xbf16>, vector<32x32xbf16>, vector<8x32xf32> -> vector<8x32xf32>
    %23 = arith.addf %17, %22 : vector<8x32xf32>
    %24 = vector.extract_strided_slice %0 {offsets = [4, 0, 0], sizes = [1, 8, 32], strides = [1, 1, 1]} : vector<7x8x32xbf16> to vector<1x8x32xbf16>
    %25 = vector.shape_cast %24 : vector<1x8x32xbf16> to vector<8x32xbf16>
    %c4 = arith.constant 4 : index
    %c0_14 = arith.constant 0 : index
    %c0_15 = arith.constant 0 : index
    %26 = vector.load %arg2[%c4, %c0_14, %c0_15] : memref<7x32x32xbf16, #tpu.memory_space<vmem>>, vector<1x32x32xbf16>
    %27 = vector.shape_cast %26 : vector<1x32x32xbf16> to vector<32x32xbf16>
    %cst_16 = arith.constant dense<0.000000e+00> : vector<8x32xf32>
    %28 = tpu.matmul %25, %27, %cst_16 {dimension_numbers = #tpu.dot_dimension_numbers<[1], [0], [0], [1], [0, 0, 1, 1], [], []>} : vector<8x32xbf16>, vector<32x32xbf16>, vector<8x32xf32> -> vector<8x32xf32>
    %29 = arith.addf %23, %28 : vector<8x32xf32>
    %30 = vector.extract_strided_slice %0 {offsets = [5, 0, 0], sizes = [1, 8, 32], strides = [1, 1, 1]} : vector<7x8x32xbf16> to vector<1x8x32xbf16>
    %31 = vector.shape_cast %30 : vector<1x8x32xbf16> to vector<8x32xbf16>
    %c5 = arith.constant 5 : index
    %c0_17 = arith.constant 0 : index
    %c0_18 = arith.constant 0 : index
    %32 = vector.load %arg2[%c5, %c0_17, %c0_18] : memref<7x32x32xbf16, #tpu.memory_space<vmem>>, vector<1x32x32xbf16>
    %33 = vector.shape_cast %32 : vector<1x32x32xbf16> to vector<32x32xbf16>
    %cst_19 = arith.constant dense<0.000000e+00> : vector<8x32xf32>
    %34 = tpu.matmul %31, %33, %cst_19 {dimension_numbers = #tpu.dot_dimension_numbers<[1], [0], [0], [1], [0, 0, 1, 1], [], []>} : vector<8x32xbf16>, vector<32x32xbf16>, vector<8x32xf32> -> vector<8x32xf32>
    %35 = arith.addf %29, %34 : vector<8x32xf32>
    %36 = vector.extract_strided_slice %0 {offsets = [6, 0, 0], sizes = [1, 8, 32], strides = [1, 1, 1]} : vector<7x8x32xbf16> to vector<1x8x32xbf16>
    %37 = vector.shape_cast %36 : vector<1x8x32xbf16> to vector<8x32xbf16>
    %c6 = arith.constant 6 : index
    %c0_20 = arith.constant 0 : index
    %c0_21 = arith.constant 0 : index
    %38 = vector.load %arg2[%c6, %c0_20, %c0_21] : memref<7x32x32xbf16, #tpu.memory_space<vmem>>, vector<1x32x32xbf16>
    %39 = vector.shape_cast %38 : vector<1x32x32xbf16> to vector<32x32xbf16>
    %cst_22 = arith.constant dense<0.000000e+00> : vector<8x32xf32>
    %40 = tpu.matmul %37, %39, %cst_22 {dimension_numbers = #tpu.dot_dimension_numbers<[1], [0], [0], [1], [0, 0, 1, 1], [], []>} : vector<8x32xbf16>, vector<32x32xbf16>, vector<8x32xf32> -> vector<8x32xf32>
    %41 = arith.addf %35, %40 : vector<8x32xf32>
    %c0_23 = arith.constant 0 : index
    %c0_24 = arith.constant 0 : index
    %42 = vector.load %arg3[%c0_23, %c0_24] : memref<1x32xf32, #tpu.memory_space<vmem>>, vector<1x32xf32>
    %43 = vector.broadcast %42 : vector<1x32xf32> to vector<8x32xf32>
    %44 = arith.addf %41, %43 : vector<8x32xf32>
    %cst_25 = arith.constant 1.702000e+00 : f32
    %45 = vector.broadcast %cst_25 : f32 to vector<8x32xf32>
    %46 = arith.mulf %45, %44 : vector<8x32xf32>
    %47 = arith.negf %46 : vector<8x32xf32>
    %48 = math.exp %47 : vector<8x32xf32>
    %cst_26 = arith.constant 1.000000e+00 : f32
    %49 = vector.broadcast %cst_26 : f32 to vector<8x32xf32>
    %50 = arith.addf %49, %48 : vector<8x32xf32>
    %51 = arith.divf %49, %50 : vector<8x32xf32>
    %52 = arith.mulf %44, %51 : vector<8x32xf32>
    %c0_27 = arith.constant 0 : index
    %c0_28 = arith.constant 0 : index
    %53 = vector.load %arg4[%c0_27, %c0_28] : memref<1x32xf32, #tpu.memory_space<vmem>>, vector<1x32xf32>
    %54 = vector.broadcast %53 : vector<1x32xf32> to vector<8x32xf32>
    %55 = arith.mulf %52, %54 : vector<8x32xf32>
    %c0_29 = arith.constant 0 : index
    %c0_30 = arith.constant 0 : index
    %56 = vector.load %arg5[%c0_29, %c0_30] : memref<1x32xf32, #tpu.memory_space<vmem>>, vector<1x32xf32>
    %57 = vector.broadcast %56 : vector<1x32xf32> to vector<8x32xf32>
    %58 = arith.addf %55, %57 : vector<8x32xf32>
    %59 = arith.truncf %58 : vector<8x32xf32> to vector<8x32xbf16>
    %c0_31 = arith.constant 0 : index
    %c0_32 = arith.constant 0 : index
    %60 = vector.load %arg6[%c0_31, %c0_32] : memref<32x32xbf16, #tpu.memory_space<vmem>>, vector<32x32xbf16>
    %cst_33 = arith.constant dense<0.000000e+00> : vector<8x32xf32>
    %61 = tpu.matmul %59, %60, %cst_33 {dimension_numbers = #tpu.dot_dimension_numbers<[1], [0], [0], [1], [0, 0, 1, 1], [], []>} : vector<8x32xbf16>, vector<32x32xbf16>, vector<8x32xf32> -> vector<8x32xf32>
    %62 = vector.shape_cast %0 : vector<7x8x32xbf16> to vector<56x32xbf16>
    %c0_34 = arith.constant 0 : index
    %c0_35 = arith.constant 0 : index
    %63 = vector.load %arg7[%c0_34, %c0_35] : memref<32x32xbf16, #tpu.memory_space<vmem>>, vector<32x32xbf16>
    %cst_36 = arith.constant dense<0.000000e+00> : vector<56x32xf32>
    %64 = tpu.matmul %62, %63, %cst_36 {dimension_numbers = #tpu.dot_dimension_numbers<[1], [0], [0], [1], [0, 0, 1, 1], [], []>} : vector<56x32xbf16>, vector<32x32xbf16>, vector<56x32xf32> -> vector<56x32xf32>
    %65 = vector.shape_cast %64 : vector<56x32xf32> to vector<7x8x32xf32>
    %66 = vector.shape_cast %61 : vector<8x32xf32> to vector<1x8x32xf32>
    %67 = vector.broadcast %66 : vector<1x8x32xf32> to vector<7x8x32xf32>
    %68 = arith.mulf %67, %65 : vector<7x8x32xf32>
    %69 = vector.shape_cast %68 : vector<7x8x32xf32> to vector<56x32xf32>
    %70 = arith.truncf %69 : vector<56x32xf32> to vector<56x32xbf16>
    %c0_37 = arith.constant 0 : index
    %c0_38 = arith.constant 0 : index
    %71 = vector.load %arg8[%c0_37, %c0_38] : memref<32x32xbf16, #tpu.memory_space<vmem>>, vector<32x32xbf16>
    %cst_39 = arith.constant dense<0.000000e+00> : vector<56x32xf32>
    %72 = tpu.matmul %70, %71, %cst_39 {dimension_numbers = #tpu.dot_dimension_numbers<[1], [0], [0], [1], [0, 0, 1, 1], [], []>} : vector<56x32xbf16>, vector<32x32xbf16>, vector<56x32xf32> -> vector<56x32xf32>
    %cst_40 = arith.constant 0.353553385 : f32
    %73 = vector.broadcast %cst_40 : f32 to vector<56x32xf32>
    %74 = arith.mulf %72, %73 : vector<56x32xf32>
    %75 = vector.shape_cast %74 : vector<56x32xf32> to vector<7x8x32xf32>
    %cst_41 = arith.constant dense<0xFF800000> : vector<8x32xf32>
    %76 = vector.multi_reduction <maximumf>, %75, %cst_41 [0] : vector<7x8x32xf32> to vector<8x32xf32>
    %77 = vector.shape_cast %76 : vector<8x32xf32> to vector<1x8x32xf32>
    %78 = vector.broadcast %77 : vector<1x8x32xf32> to vector<7x8x32xf32>
    %79 = arith.subf %75, %78 : vector<7x8x32xf32>
    %80 = math.exp %79 : vector<7x8x32xf32>
    %cst_42 = arith.constant dense<0.000000e+00> : vector<8x32xf32>
    %81 = vector.multi_reduction <add>, %80, %cst_42 [0] : vector<7x8x32xf32> to vector<8x32xf32>
    %82 = vector.shape_cast %81 : vector<8x32xf32> to vector<1x8x32xf32>
    %83 = tpu.reciprocal %82 {approx = true} : vector<1x8x32xf32> -> vector<1x8x32xf32>
    %84 = vector.broadcast %83 : vector<1x8x32xf32> to vector<7x8x32xf32>
    %85 = arith.mulf %80, %84 : vector<7x8x32xf32>
    %86 = vector.extract_strided_slice %0 {offsets = [0, 0, 0], sizes = [1, 8, 32], strides = [1, 1, 1]} : vector<7x8x32xbf16> to vector<1x8x32xbf16>
    %87 = vector.shape_cast %86 : vector<1x8x32xbf16> to vector<8x32xbf16>
    %c0_43 = arith.constant 0 : index
    %c0_44 = arith.constant 0 : index
    %c0_45 = arith.constant 0 : index
    %88 = vector.load %arg9[%c0_43, %c0_44, %c0_45] : memref<7x32x32xbf16, #tpu.memory_space<vmem>>, vector<1x32x32xbf16>
    %89 = vector.shape_cast %88 : vector<1x32x32xbf16> to vector<32x32xbf16>
    %cst_46 = arith.constant dense<0.000000e+00> : vector<8x32xf32>
    %90 = tpu.matmul %87, %89, %cst_46 {dimension_numbers = #tpu.dot_dimension_numbers<[1], [0], [0], [1], [0, 0, 1, 1], [], []>} : vector<8x32xbf16>, vector<32x32xbf16>, vector<8x32xf32> -> vector<8x32xf32>
    %c0_47 = arith.constant 0 : index
    %c0_48 = arith.constant 0 : index
    %c0_49 = arith.constant 0 : index
    %91 = vector.load %arg10[%c0_47, %c0_48, %c0_49] : memref<7x1x32xf32, #tpu.memory_space<vmem>>, vector<1x1x32xf32>
    %92 = vector.shape_cast %91 : vector<1x1x32xf32> to vector<1x32xf32>
    %93 = vector.broadcast %92 : vector<1x32xf32> to vector<8x32xf32>
    %94 = arith.addf %90, %93 : vector<8x32xf32>
    %cst_50 = arith.constant 1.702000e+00 : f32
    %95 = vector.broadcast %cst_50 : f32 to vector<8x32xf32>
    %96 = arith.mulf %95, %94 : vector<8x32xf32>
    %97 = arith.negf %96 : vector<8x32xf32>
    %98 = math.exp %97 : vector<8x32xf32>
    %cst_51 = arith.constant 1.000000e+00 : f32
    %99 = vector.broadcast %cst_51 : f32 to vector<8x32xf32>
    %100 = arith.addf %99, %98 : vector<8x32xf32>
    %101 = arith.divf %99, %100 : vector<8x32xf32>
    %102 = arith.mulf %94, %101 : vector<8x32xf32>
    %c0_52 = arith.constant 0 : index
    %c0_53 = arith.constant 0 : index
    %c0_54 = arith.constant 0 : index
    %103 = vector.load %arg11[%c0_52, %c0_53, %c0_54] : memref<7x1x32xf32, #tpu.memory_space<vmem>>, vector<1x1x32xf32>
    %104 = vector.shape_cast %103 : vector<1x1x32xf32> to vector<1x32xf32>
    %105 = vector.broadcast %104 : vector<1x32xf32> to vector<8x32xf32>
    %106 = arith.mulf %102, %105 : vector<8x32xf32>
    %c0_55 = arith.constant 0 : index
    %c0_56 = arith.constant 0 : index
    %c0_57 = arith.constant 0 : index
    %107 = vector.load %arg12[%c0_55, %c0_56, %c0_57] : memref<7x1x32xf32, #tpu.memory_space<vmem>>, vector<1x1x32xf32>
    %108 = vector.shape_cast %107 : vector<1x1x32xf32> to vector<1x32xf32>
    %109 = vector.broadcast %108 : vector<1x32xf32> to vector<8x32xf32>
    %110 = arith.addf %106, %109 : vector<8x32xf32>
    %111 = vector.extract_strided_slice %85 {offsets = [0, 0, 0], sizes = [1, 8, 32], strides = [1, 1, 1]} : vector<7x8x32xf32> to vector<1x8x32xf32>
    %112 = vector.shape_cast %111 : vector<1x8x32xf32> to vector<8x32xf32>
    %113 = arith.mulf %110, %112 : vector<8x32xf32>
    %c0_58 = arith.constant 0 : index
    %c0_59 = arith.constant 0 : index
    %114 = vector.load %arg13[%c0_58, %c0_59] : memref<8x224xf32, #tpu.memory_space<vmem>>, vector<8x32xf32>
    tpu.vector_store %arg13[%c0_58, %c0_59], %113 {strides = array<i32>} : memref<8x224xf32, #tpu.memory_space<vmem>>, vector<8x32xf32>,
    %115 = vector.extract_strided_slice %0 {offsets = [1, 0, 0], sizes = [1, 8, 32], strides = [1, 1, 1]} : vector<7x8x32xbf16> to vector<1x8x32xbf16>
    %116 = vector.shape_cast %115 : vector<1x8x32xbf16> to vector<8x32xbf16>
    %c1_60 = arith.constant 1 : index
    %c0_61 = arith.constant 0 : index
    %c0_62 = arith.constant 0 : index
    %117 = vector.load %arg9[%c1_60, %c0_61, %c0_62] : memref<7x32x32xbf16, #tpu.memory_space<vmem>>, vector<1x32x32xbf16>
    %118 = vector.shape_cast %117 : vector<1x32x32xbf16> to vector<32x32xbf16>
    %cst_63 = arith.constant dense<0.000000e+00> : vector<8x32xf32>
    %119 = tpu.matmul %116, %118, %cst_63 {dimension_numbers = #tpu.dot_dimension_numbers<[1], [0], [0], [1], [0, 0, 1, 1], [], []>} : vector<8x32xbf16>, vector<32x32xbf16>, vector<8x32xf32> -> vector<8x32xf32>
    %c1_64 = arith.constant 1 : index
    %c0_65 = arith.constant 0 : index
    %c0_66 = arith.constant 0 : index
    %120 = vector.load %arg10[%c1_64, %c0_65, %c0_66] : memref<7x1x32xf32, #tpu.memory_space<vmem>>, vector<1x1x32xf32>
    %121 = vector.shape_cast %120 : vector<1x1x32xf32> to vector<1x32xf32>
    %122 = vector.broadcast %121 : vector<1x32xf32> to vector<8x32xf32>
    %123 = arith.addf %119, %122 : vector<8x32xf32>
    %cst_67 = arith.constant 1.702000e+00 : f32
    %124 = vector.broadcast %cst_67 : f32 to vector<8x32xf32>
    %125 = arith.mulf %124, %123 : vector<8x32xf32>
    %126 = arith.negf %125 : vector<8x32xf32>
    %127 = math.exp %126 : vector<8x32xf32>
    %cst_68 = arith.constant 1.000000e+00 : f32
    %128 = vector.broadcast %cst_68 : f32 to vector<8x32xf32>
    %129 = arith.addf %128, %127 : vector<8x32xf32>
    %130 = arith.divf %128, %129 : vector<8x32xf32>
    %131 = arith.mulf %123, %130 : vector<8x32xf32>
    %c1_69 = arith.constant 1 : index
    %c0_70 = arith.constant 0 : index
    %c0_71 = arith.constant 0 : index
    %132 = vector.load %arg11[%c1_69, %c0_70, %c0_71] : memref<7x1x32xf32, #tpu.memory_space<vmem>>, vector<1x1x32xf32>
    %133 = vector.shape_cast %132 : vector<1x1x32xf32> to vector<1x32xf32>
    %134 = vector.broadcast %133 : vector<1x32xf32> to vector<8x32xf32>
    %135 = arith.mulf %131, %134 : vector<8x32xf32>
    %c1_72 = arith.constant 1 : index
    %c0_73 = arith.constant 0 : index
    %c0_74 = arith.constant 0 : index
    %136 = vector.load %arg12[%c1_72, %c0_73, %c0_74] : memref<7x1x32xf32, #tpu.memory_space<vmem>>, vector<1x1x32xf32>
    %137 = vector.shape_cast %136 : vector<1x1x32xf32> to vector<1x32xf32>
    %138 = vector.broadcast %137 : vector<1x32xf32> to vector<8x32xf32>
    %139 = arith.addf %135, %138 : vector<8x32xf32>
    %140 = vector.extract_strided_slice %85 {offsets = [1, 0, 0], sizes = [1, 8, 32], strides = [1, 1, 1]} : vector<7x8x32xf32> to vector<1x8x32xf32>
    %141 = vector.shape_cast %140 : vector<1x8x32xf32> to vector<8x32xf32>
    %142 = arith.mulf %139, %141 : vector<8x32xf32>
    %c0_75 = arith.constant 0 : index
    %c32 = arith.constant 32 : index
    %143 = vector.load %arg13[%c0_75, %c32] : memref<8x224xf32, #tpu.memory_space<vmem>>, vector<8x32xf32>
    tpu.vector_store %arg13[%c0_75, %c32], %142 {strides = array<i32>} : memref<8x224xf32, #tpu.memory_space<vmem>>, vector<8x32xf32>,
    %144 = vector.extract_strided_slice %0 {offsets = [2, 0, 0], sizes = [1, 8, 32], strides = [1, 1, 1]} : vector<7x8x32xbf16> to vector<1x8x32xbf16>
    %145 = vector.shape_cast %144 : vector<1x8x32xbf16> to vector<8x32xbf16>
    %c2_76 = arith.constant 2 : index
    %c0_77 = arith.constant 0 : index
    %c0_78 = arith.constant 0 : index
    %146 = vector.load %arg9[%c2_76, %c0_77, %c0_78] : memref<7x32x32xbf16, #tpu.memory_space<vmem>>, vector<1x32x32xbf16>
    %147 = vector.shape_cast %146 : vector<1x32x32xbf16> to vector<32x32xbf16>
    %cst_79 = arith.constant dense<0.000000e+00> : vector<8x32xf32>
    %148 = tpu.matmul %145, %147, %cst_79 {dimension_numbers = #tpu.dot_dimension_numbers<[1], [0], [0], [1], [0, 0, 1, 1], [], []>} : vector<8x32xbf16>, vector<32x32xbf16>, vector<8x32xf32> -> vector<8x32xf32>
    %c2_80 = arith.constant 2 : index
    %c0_81 = arith.constant 0 : index
    %c0_82 = arith.constant 0 : index
    %149 = vector.load %arg10[%c2_80, %c0_81, %c0_82] : memref<7x1x32xf32, #tpu.memory_space<vmem>>, vector<1x1x32xf32>
    %150 = vector.shape_cast %149 : vector<1x1x32xf32> to vector<1x32xf32>
    %151 = vector.broadcast %150 : vector<1x32xf32> to vector<8x32xf32>
    %152 = arith.addf %148, %151 : vector<8x32xf32>
    %cst_83 = arith.constant 1.702000e+00 : f32
    %153 = vector.broadcast %cst_83 : f32 to vector<8x32xf32>
    %154 = arith.mulf %153, %152 : vector<8x32xf32>
    %155 = arith.negf %154 : vector<8x32xf32>
    %156 = math.exp %155 : vector<8x32xf32>
    %cst_84 = arith.constant 1.000000e+00 : f32
    %157 = vector.broadcast %cst_84 : f32 to vector<8x32xf32>
    %158 = arith.addf %157, %156 : vector<8x32xf32>
    %159 = arith.divf %157, %158 : vector<8x32xf32>
    %160 = arith.mulf %152, %159 : vector<8x32xf32>
    %c2_85 = arith.constant 2 : index
    %c0_86 = arith.constant 0 : index
    %c0_87 = arith.constant 0 : index
    %161 = vector.load %arg11[%c2_85, %c0_86, %c0_87] : memref<7x1x32xf32, #tpu.memory_space<vmem>>, vector<1x1x32xf32>
    %162 = vector.shape_cast %161 : vector<1x1x32xf32> to vector<1x32xf32>
    %163 = vector.broadcast %162 : vector<1x32xf32> to vector<8x32xf32>
    %164 = arith.mulf %160, %163 : vector<8x32xf32>
    %c2_88 = arith.constant 2 : index
    %c0_89 = arith.constant 0 : index
    %c0_90 = arith.constant 0 : index
    %165 = vector.load %arg12[%c2_88, %c0_89, %c0_90] : memref<7x1x32xf32, #tpu.memory_space<vmem>>, vector<1x1x32xf32>
    %166 = vector.shape_cast %165 : vector<1x1x32xf32> to vector<1x32xf32>
    %167 = vector.broadcast %166 : vector<1x32xf32> to vector<8x32xf32>
    %168 = arith.addf %164, %167 : vector<8x32xf32>
    %169 = vector.extract_strided_slice %85 {offsets = [2, 0, 0], sizes = [1, 8, 32], strides = [1, 1, 1]} : vector<7x8x32xf32> to vector<1x8x32xf32>
    %170 = vector.shape_cast %169 : vector<1x8x32xf32> to vector<8x32xf32>
    %171 = arith.mulf %168, %170 : vector<8x32xf32>
    %c0_91 = arith.constant 0 : index
    %c64 = arith.constant 64 : index
    %172 = vector.load %arg13[%c0_91, %c64] : memref<8x224xf32, #tpu.memory_space<vmem>>, vector<8x32xf32>
    tpu.vector_store %arg13[%c0_91, %c64], %171 {strides = array<i32>} : memref<8x224xf32, #tpu.memory_space<vmem>>, vector<8x32xf32>,
    %173 = vector.extract_strided_slice %0 {offsets = [3, 0, 0], sizes = [1, 8, 32], strides = [1, 1, 1]} : vector<7x8x32xbf16> to vector<1x8x32xbf16>
    %174 = vector.shape_cast %173 : vector<1x8x32xbf16> to vector<8x32xbf16>
    %c3_92 = arith.constant 3 : index
    %c0_93 = arith.constant 0 : index
    %c0_94 = arith.constant 0 : index
    %175 = vector.load %arg9[%c3_92, %c0_93, %c0_94] : memref<7x32x32xbf16, #tpu.memory_space<vmem>>, vector<1x32x32xbf16>
    %176 = vector.shape_cast %175 : vector<1x32x32xbf16> to vector<32x32xbf16>
    %cst_95 = arith.constant dense<0.000000e+00> : vector<8x32xf32>
    %177 = tpu.matmul %174, %176, %cst_95 {dimension_numbers = #tpu.dot_dimension_numbers<[1], [0], [0], [1], [0, 0, 1, 1], [], []>} : vector<8x32xbf16>, vector<32x32xbf16>, vector<8x32xf32> -> vector<8x32xf32>
    %c3_96 = arith.constant 3 : index
    %c0_97 = arith.constant 0 : index
    %c0_98 = arith.constant 0 : index
    %178 = vector.load %arg10[%c3_96, %c0_97, %c0_98] : memref<7x1x32xf32, #tpu.memory_space<vmem>>, vector<1x1x32xf32>
    %179 = vector.shape_cast %178 : vector<1x1x32xf32> to vector<1x32xf32>
    %180 = vector.broadcast %179 : vector<1x32xf32> to vector<8x32xf32>
    %181 = arith.addf %177, %180 : vector<8x32xf32>
    %cst_99 = arith.constant 1.702000e+00 : f32
    %182 = vector.broadcast %cst_99 : f32 to vector<8x32xf32>
    %183 = arith.mulf %182, %181 : vector<8x32xf32>
    %184 = arith.negf %183 : vector<8x32xf32>
    %185 = math.exp %184 : vector<8x32xf32>
    %cst_100 = arith.constant 1.000000e+00 : f32
    %186 = vector.broadcast %cst_100 : f32 to vector<8x32xf32>
    %187 = arith.addf %186, %185 : vector<8x32xf32>
    %188 = arith.divf %186, %187 : vector<8x32xf32>
    %189 = arith.mulf %181, %188 : vector<8x32xf32>
    %c3_101 = arith.constant 3 : index
    %c0_102 = arith.constant 0 : index
    %c0_103 = arith.constant 0 : index
    %190 = vector.load %arg11[%c3_101, %c0_102, %c0_103] : memref<7x1x32xf32, #tpu.memory_space<vmem>>, vector<1x1x32xf32>
    %191 = vector.shape_cast %190 : vector<1x1x32xf32> to vector<1x32xf32>
    %192 = vector.broadcast %191 : vector<1x32xf32> to vector<8x32xf32>
    %193 = arith.mulf %189, %192 : vector<8x32xf32>
    %c3_104 = arith.constant 3 : index
    %c0_105 = arith.constant 0 : index
    %c0_106 = arith.constant 0 : index
    %194 = vector.load %arg12[%c3_104, %c0_105, %c0_106] : memref<7x1x32xf32, #tpu.memory_space<vmem>>, vector<1x1x32xf32>
    %195 = vector.shape_cast %194 : vector<1x1x32xf32> to vector<1x32xf32>
    %196 = vector.broadcast %195 : vector<1x32xf32> to vector<8x32xf32>
    %197 = arith.addf %193, %196 : vector<8x32xf32>
    %198 = vector.extract_strided_slice %85 {offsets = [3, 0, 0], sizes = [1, 8, 32], strides = [1, 1, 1]} : vector<7x8x32xf32> to vector<1x8x32xf32>
    %199 = vector.shape_cast %198 : vector<1x8x32xf32> to vector<8x32xf32>
    %200 = arith.mulf %197, %199 : vector<8x32xf32>
    %c0_107 = arith.constant 0 : index
    %c96 = arith.constant 96 : index
    %201 = vector.load %arg13[%c0_107, %c96] : memref<8x224xf32, #tpu.memory_space<vmem>>, vector<8x32xf32>
    tpu.vector_store %arg13[%c0_107, %c96], %200 {strides = array<i32>} : memref<8x224xf32, #tpu.memory_space<vmem>>, vector<8x32xf32>,
    %202 = vector.extract_strided_slice %0 {offsets = [4, 0, 0], sizes = [1, 8, 32], strides = [1, 1, 1]} : vector<7x8x32xbf16> to vector<1x8x32xbf16>
    %203 = vector.shape_cast %202 : vector<1x8x32xbf16> to vector<8x32xbf16>
    %c4_108 = arith.constant 4 : index
    %c0_109 = arith.constant 0 : index
    %c0_110 = arith.constant 0 : index
    %204 = vector.load %arg9[%c4_108, %c0_109, %c0_110] : memref<7x32x32xbf16, #tpu.memory_space<vmem>>, vector<1x32x32xbf16>
    %205 = vector.shape_cast %204 : vector<1x32x32xbf16> to vector<32x32xbf16>
    %cst_111 = arith.constant dense<0.000000e+00> : vector<8x32xf32>
    %206 = tpu.matmul %203, %205, %cst_111 {dimension_numbers = #tpu.dot_dimension_numbers<[1], [0], [0], [1], [0, 0, 1, 1], [], []>} : vector<8x32xbf16>, vector<32x32xbf16>, vector<8x32xf32> -> vector<8x32xf32>
    %c4_112 = arith.constant 4 : index
    %c0_113 = arith.constant 0 : index
    %c0_114 = arith.constant 0 : index
    %207 = vector.load %arg10[%c4_112, %c0_113, %c0_114] : memref<7x1x32xf32, #tpu.memory_space<vmem>>, vector<1x1x32xf32>
    %208 = vector.shape_cast %207 : vector<1x1x32xf32> to vector<1x32xf32>
    %209 = vector.broadcast %208 : vector<1x32xf32> to vector<8x32xf32>
    %210 = arith.addf %206, %209 : vector<8x32xf32>
    %cst_115 = arith.constant 1.702000e+00 : f32
    %211 = vector.broadcast %cst_115 : f32 to vector<8x32xf32>
    %212 = arith.mulf %211, %210 : vector<8x32xf32>
    %213 = arith.negf %212 : vector<8x32xf32>
    %214 = math.exp %213 : vector<8x32xf32>
    %cst_116 = arith.constant 1.000000e+00 : f32
    %215 = vector.broadcast %cst_116 : f32 to vector<8x32xf32>
    %216 = arith.addf %215, %214 : vector<8x32xf32>
    %217 = arith.divf %215, %216 : vector<8x32xf32>
    %218 = arith.mulf %210, %217 : vector<8x32xf32>
    %c4_117 = arith.constant 4 : index
    %c0_118 = arith.constant 0 : index
    %c0_119 = arith.constant 0 : index
    %219 = vector.load %arg11[%c4_117, %c0_118, %c0_119] : memref<7x1x32xf32, #tpu.memory_space<vmem>>, vector<1x1x32xf32>
    %220 = vector.shape_cast %219 : vector<1x1x32xf32> to vector<1x32xf32>
    %221 = vector.broadcast %220 : vector<1x32xf32> to vector<8x32xf32>
    %222 = arith.mulf %218, %221 : vector<8x32xf32>
    %c4_120 = arith.constant 4 : index
    %c0_121 = arith.constant 0 : index
    %c0_122 = arith.constant 0 : index
    %223 = vector.load %arg12[%c4_120, %c0_121, %c0_122] : memref<7x1x32xf32, #tpu.memory_space<vmem>>, vector<1x1x32xf32>
    %224 = vector.shape_cast %223 : vector<1x1x32xf32> to vector<1x32xf32>
    %225 = vector.broadcast %224 : vector<1x32xf32> to vector<8x32xf32>
    %226 = arith.addf %222, %225 : vector<8x32xf32>
    %227 = vector.extract_strided_slice %85 {offsets = [4, 0, 0], sizes = [1, 8, 32], strides = [1, 1, 1]} : vector<7x8x32xf32> to vector<1x8x32xf32>
    %228 = vector.shape_cast %227 : vector<1x8x32xf32> to vector<8x32xf32>
    %229 = arith.mulf %226, %228 : vector<8x32xf32>
    %c0_123 = arith.constant 0 : index
    %c128 = arith.constant 128 : index
    %230 = vector.load %arg13[%c0_123, %c128] : memref<8x224xf32, #tpu.memory_space<vmem>>, vector<8x32xf32>
    tpu.vector_store %arg13[%c0_123, %c128], %229 {strides = array<i32>} : memref<8x224xf32, #tpu.memory_space<vmem>>, vector<8x32xf32>,
    %231 = vector.extract_strided_slice %0 {offsets = [5, 0, 0], sizes = [1, 8, 32], strides = [1, 1, 1]} : vector<7x8x32xbf16> to vector<1x8x32xbf16>
    %232 = vector.shape_cast %231 : vector<1x8x32xbf16> to vector<8x32xbf16>
    %c5_124 = arith.constant 5 : index
    %c0_125 = arith.constant 0 : index
    %c0_126 = arith.constant 0 : index
    %233 = vector.load %arg9[%c5_124, %c0_125, %c0_126] : memref<7x32x32xbf16, #tpu.memory_space<vmem>>, vector<1x32x32xbf16>
    %234 = vector.shape_cast %233 : vector<1x32x32xbf16> to vector<32x32xbf16>
    %cst_127 = arith.constant dense<0.000000e+00> : vector<8x32xf32>
    %235 = tpu.matmul %232, %234, %cst_127 {dimension_numbers = #tpu.dot_dimension_numbers<[1], [0], [0], [1], [0, 0, 1, 1], [], []>} : vector<8x32xbf16>, vector<32x32xbf16>, vector<8x32xf32> -> vector<8x32xf32>
    %c5_128 = arith.constant 5 : index
    %c0_129 = arith.constant 0 : index
    %c0_130 = arith.constant 0 : index
    %236 = vector.load %arg10[%c5_128, %c0_129, %c0_130] : memref<7x1x32xf32, #tpu.memory_space<vmem>>, vector<1x1x32xf32>
    %237 = vector.shape_cast %236 : vector<1x1x32xf32> to vector<1x32xf32>
    %238 = vector.broadcast %237 : vector<1x32xf32> to vector<8x32xf32>
    %239 = arith.addf %235, %238 : vector<8x32xf32>
    %cst_131 = arith.constant 1.702000e+00 : f32
    %240 = vector.broadcast %cst_131 : f32 to vector<8x32xf32>
    %241 = arith.mulf %240, %239 : vector<8x32xf32>
    %242 = arith.negf %241 : vector<8x32xf32>
    %243 = math.exp %242 : vector<8x32xf32>
    %cst_132 = arith.constant 1.000000e+00 : f32
    %244 = vector.broadcast %cst_132 : f32 to vector<8x32xf32>
    %245 = arith.addf %244, %243 : vector<8x32xf32>
    %246 = arith.divf %244, %245 : vector<8x32xf32>
    %247 = arith.mulf %239, %246 : vector<8x32xf32>
    %c5_133 = arith.constant 5 : index
    %c0_134 = arith.constant 0 : index
    %c0_135 = arith.constant 0 : index
    %248 = vector.load %arg11[%c5_133, %c0_134, %c0_135] : memref<7x1x32xf32, #tpu.memory_space<vmem>>, vector<1x1x32xf32>
    %249 = vector.shape_cast %248 : vector<1x1x32xf32> to vector<1x32xf32>
    %250 = vector.broadcast %249 : vector<1x32xf32> to vector<8x32xf32>
    %251 = arith.mulf %247, %250 : vector<8x32xf32>
    %c5_136 = arith.constant 5 : index
    %c0_137 = arith.constant 0 : index
    %c0_138 = arith.constant 0 : index
    %252 = vector.load %arg12[%c5_136, %c0_137, %c0_138] : memref<7x1x32xf32, #tpu.memory_space<vmem>>, vector<1x1x32xf32>
    %253 = vector.shape_cast %252 : vector<1x1x32xf32> to vector<1x32xf32>
    %254 = vector.broadcast %253 : vector<1x32xf32> to vector<8x32xf32>
    %255 = arith.addf %251, %254 : vector<8x32xf32>
    %256 = vector.extract_strided_slice %85 {offsets = [5, 0, 0], sizes = [1, 8, 32], strides = [1, 1, 1]} : vector<7x8x32xf32> to vector<1x8x32xf32>
    %257 = vector.shape_cast %256 : vector<1x8x32xf32> to vector<8x32xf32>
    %258 = arith.mulf %255, %257 : vector<8x32xf32>
    %c0_139 = arith.constant 0 : index
    %c160 = arith.constant 160 : index
    %259 = vector.load %arg13[%c0_139, %c160] : memref<8x224xf32, #tpu.memory_space<vmem>>, vector<8x32xf32>
    tpu.vector_store %arg13[%c0_139, %c160], %258 {strides = array<i32>} : memref<8x224xf32, #tpu.memory_space<vmem>>, vector<8x32xf32>,
    %260 = vector.extract_strided_slice %0 {offsets = [6, 0, 0], sizes = [1, 8, 32], strides = [1, 1, 1]} : vector<7x8x32xbf16> to vector<1x8x32xbf16>
    %261 = vector.shape_cast %260 : vector<1x8x32xbf16> to vector<8x32xbf16>
    %c6_140 = arith.constant 6 : index
    %c0_141 = arith.constant 0 : index
    %c0_142 = arith.constant 0 : index
    %262 = vector.load %arg9[%c6_140, %c0_141, %c0_142] : memref<7x32x32xbf16, #tpu.memory_space<vmem>>, vector<1x32x32xbf16>
    %263 = vector.shape_cast %262 : vector<1x32x32xbf16> to vector<32x32xbf16>
    %cst_143 = arith.constant dense<0.000000e+00> : vector<8x32xf32>
    %264 = tpu.matmul %261, %263, %cst_143 {dimension_numbers = #tpu.dot_dimension_numbers<[1], [0], [0], [1], [0, 0, 1, 1], [], []>} : vector<8x32xbf16>, vector<32x32xbf16>, vector<8x32xf32> -> vector<8x32xf32>
    %c6_144 = arith.constant 6 : index
    %c0_145 = arith.constant 0 : index
    %c0_146 = arith.constant 0 : index
    %265 = vector.load %arg10[%c6_144, %c0_145, %c0_146] : memref<7x1x32xf32, #tpu.memory_space<vmem>>, vector<1x1x32xf32>
    %266 = vector.shape_cast %265 : vector<1x1x32xf32> to vector<1x32xf32>
    %267 = vector.broadcast %266 : vector<1x32xf32> to vector<8x32xf32>
    %268 = arith.addf %264, %267 : vector<8x32xf32>
    %cst_147 = arith.constant 1.702000e+00 : f32
    %269 = vector.broadcast %cst_147 : f32 to vector<8x32xf32>
    %270 = arith.mulf %269, %268 : vector<8x32xf32>
    %271 = arith.negf %270 : vector<8x32xf32>
    %272 = math.exp %271 : vector<8x32xf32>
    %cst_148 = arith.constant 1.000000e+00 : f32
    %273 = vector.broadcast %cst_148 : f32 to vector<8x32xf32>
    %274 = arith.addf %273, %272 : vector<8x32xf32>
    %275 = arith.divf %273, %274 : vector<8x32xf32>
    %276 = arith.mulf %268, %275 : vector<8x32xf32>
    %c6_149 = arith.constant 6 : index
    %c0_150 = arith.constant 0 : index
    %c0_151 = arith.constant 0 : index
    %277 = vector.load %arg11[%c6_149, %c0_150, %c0_151] : memref<7x1x32xf32, #tpu.memory_space<vmem>>, vector<1x1x32xf32>
    %278 = vector.shape_cast %277 : vector<1x1x32xf32> to vector<1x32xf32>
    %279 = vector.broadcast %278 : vector<1x32xf32> to vector<8x32xf32>
    %280 = arith.mulf %276, %279 : vector<8x32xf32>
    %c6_152 = arith.constant 6 : index
    %c0_153 = arith.constant 0 : index
    %c0_154 = arith.constant 0 : index
    %281 = vector.load %arg12[%c6_152, %c0_153, %c0_154] : memref<7x1x32xf32, #tpu.memory_space<vmem>>, vector<1x1x32xf32>
    %282 = vector.shape_cast %281 : vector<1x1x32xf32> to vector<1x32xf32>
    %283 = vector.broadcast %282 : vector<1x32xf32> to vector<8x32xf32>
    %284 = arith.addf %280, %283 : vector<8x32xf32>
    %285 = vector.extract_strided_slice %85 {offsets = [6, 0, 0], sizes = [1, 8, 32], strides = [1, 1, 1]} : vector<7x8x32xf32> to vector<1x8x32xf32>
    %286 = vector.shape_cast %285 : vector<1x8x32xf32> to vector<8x32xf32>
    %287 = arith.mulf %284, %286 : vector<8x32xf32>
    %c0_155 = arith.constant 0 : index
    %c192 = arith.constant 192 : index
    %288 = vector.load %arg13[%c0_155, %c192] : memref<8x224xf32, #tpu.memory_space<vmem>>, vector<8x32xf32>
    tpu.vector_store %arg13[%c0_155, %c192], %287 {strides = array<i32>} : memref<8x224xf32, #tpu.memory_space<vmem>>, vector<8x32xf32>,
    return
  }
  func.func @transform_0(%arg0: i32) -> (i32, i32, i32) {
    %c0_i32 = arith.constant 0 : i32
    %c0_i32_0 = arith.constant 0 : i32
    %c0_i32_1 = arith.constant 0 : i32
    return %c0_i32, %arg0, %c0_i32_0 : i32, i32, i32
  }
  func.func @transform_1(%arg0: i32) -> (i32, i32, i32) {
    %c0_i32 = arith.constant 0 : i32
    %c0_i32_0 = arith.constant 0 : i32
    %c0_i32_1 = arith.constant 0 : i32
    %c0_i32_2 = arith.constant 0 : i32
    return %c0_i32, %c0_i32_0, %c0_i32_1 : i32, i32, i32
  }
  func.func @transform_2(%arg0: i32) -> (i32, i32) {
    %c0_i32 = arith.constant 0 : i32
    %c0_i32_0 = arith.constant 0 : i32
    %c0_i32_1 = arith.constant 0 : i32
    return %c0_i32, %c0_i32_0 : i32, i32
  }
  func.func @transform_3(%arg0: i32) -> (i32, i32) {
    %c0_i32 = arith.constant 0 : i32
    %c0_i32_0 = arith.constant 0 : i32
    %c0_i32_1 = arith.constant 0 : i32
    return %c0_i32, %c0_i32_0 : i32, i32
  }
  func.func @transform_4(%arg0: i32) -> (i32, i32) {
    %c0_i32 = arith.constant 0 : i32
    %c0_i32_0 = arith.constant 0 : i32
    %c0_i32_1 = arith.constant 0 : i32
    return %c0_i32, %c0_i32_0 : i32, i32
  }
  func.func @transform_5(%arg0: i32) -> (i32, i32) {
    %c0_i32 = arith.constant 0 : i32
    %c0_i32_0 = arith.constant 0 : i32
    %c0_i32_1 = arith.constant 0 : i32
    return %c0_i32, %c0_i32_0 : i32, i32
  }
  func.func @transform_6(%arg0: i32) -> (i32, i32) {
    %c0_i32 = arith.constant 0 : i32
    %c0_i32_0 = arith.constant 0 : i32
    %c0_i32_1 = arith.constant 0 : i32
    return %c0_i32, %c0_i32_0 : i32, i32
  }
  func.func @transform_7(%arg0: i32) -> (i32, i32) {
    %c0_i32 = arith.constant 0 : i32
    %c0_i32_0 = arith.constant 0 : i32
    %c0_i32_1 = arith.constant 0 : i32
    return %c0_i32, %c0_i32_0 : i32, i32
  }
  func.func @transform_8(%arg0: i32) -> (i32, i32, i32) {
    %c0_i32 = arith.constant 0 : i32
    %c0_i32_0 = arith.constant 0 : i32
    %c0_i32_1 = arith.constant 0 : i32
    %c0_i32_2 = arith.constant 0 : i32
    return %c0_i32, %c0_i32_0, %c0_i32_1 : i32, i32, i32
  }
  func.func @transform_9(%arg0: i32) -> (i32, i32, i32) {
    %c0_i32 = arith.constant 0 : i32
    %c0_i32_0 = arith.constant 0 : i32
    %c0_i32_1 = arith.constant 0 : i32
    %c0_i32_2 = arith.constant 0 : i32
    return %c0_i32, %c0_i32_0, %c0_i32_1 : i32, i32, i32
  }
  func.func @transform_10(%arg0: i32) -> (i32, i32, i32) {
    %c0_i32 = arith.constant 0 : i32
    %c0_i32_0 = arith.constant 0 : i32
    %c0_i32_1 = arith.constant 0 : i32
    %c0_i32_2 = arith.constant 0 : i32
    return %c0_i32, %c0_i32_0, %c0_i32_1 : i32, i32, i32
  }
  func.func @transform_11(%arg0: i32) -> (i32, i32, i32) {
    %c0_i32 = arith.constant 0 : i32
    %c0_i32_0 = arith.constant 0 : i32
    %c0_i32_1 = arith.constant 0 : i32
    %c0_i32_2 = arith.constant 0 : i32
    return %c0_i32, %c0_i32_0, %c0_i32_1 : i32, i32, i32
  }
  func.func @transform_12(%arg0: i32) -> (i32, i32) {
    %c0_i32 = arith.constant 0 : i32
    %c0_i32_0 = arith.constant 0 : i32
    return %arg0, %c0_i32 : i32, i32
  }
}

</mosaic_0001>

<bundles_post_ra>
// kernel: tpu_custom_call.1
= control target key start
LH: loop header
LB: loop body
LE: loop exit
PB: predicated region body
PF: predicated region fallthrough
CT: control target
= control target key end

     0   :  { %s3731_s0 = inlined_call_operand.hbm [shape: bf16[7,16,32], index: 0, kind: input, shape index: {}]   ;;  %s3732_s1 = inlined_call_operand.hbm [shape: bf16[7,32,32], index: 1, kind: input, shape index: {}]   ;;  %s3733_s2 = inlined_call_operand.hbm [shape: f32[1,32], index: 2, kind: input, shape index: {}]   ;;  %s3734_s3 = inlined_call_operand.hbm [shape: f32[1,32], index: 3, kind: input, shape index: {}]   ;;  %s3735_s4 = inlined_call_operand.hbm [shape: f32[1,32], index: 4, kind: input, shape index: {}]   ;;  %s3736_s5 = inlined_call_operand.hbm [shape: bf16[32,32], index: 5, kind: input, shape index: {}]   ;;  %s3737_s6 = inlined_call_operand.hbm [shape: bf16[32,32], index: 6, kind: input, shape index: {}]   ;;  %s3738_s7 = inlined_call_operand.hbm [shape: bf16[32,32], index: 7, kind: input, shape index: {}]   ;;  %s3739_s8 = inlined_call_operand.hbm [shape: bf16[7,32,32], index: 8, kind: input, shape index: {}]   ;;  %s3740_s9 = inlined_call_operand.vmem [shape: f32[7,1,32], index: 9, kind: input, shape index: {}]   ;;  %s3741_s10 = inlined_call_operand.vmem [shape: f32[7,1,32], index: 10, kind: input, shape index: {}]   ;;  %s3742_s11 = inlined_call_operand.hbm [shape: f32[7,1,32], index: 11, kind: input, shape index: {}]   ;;  %s3743_s12 = inlined_call_operand.hbm [shape: f32[16,224], index: 12, kind: output, shape index: {}]  }
   0x1   :  { %3752 = sst [smem:[#allocation27_spill]] %s3732_s1 }
   0x2   :  { %3753 = sst [smem:[#allocation28_spill]] %s3733_s2 }
   0x3   :  { %3754 = sst [smem:[#allocation29_spill]] %s3734_s3 }
   0x4   :  { %3755 = sst [smem:[#allocation30_spill]] %s3735_s4 }
   0x5   :  { %3756 = sst [smem:[#allocation31_spill]] %s3736_s5 }
   0x6   :  { %3757 = sst [smem:[#allocation32_spill]] %s3737_s6 }
   0x7   :  { %3758 = sst [smem:[#allocation33_spill]] %s3743_s12 }
   0x8   :  { %17 = vsyncpa [#allocation3], 0 }
   0x9   :  { %19 = vsyncpa [#allocation3 + $0x1], 0 }
   0xa   :  { %20 = vsyncpa [#allocation6], 0 }
   0xb   :  { %21 = vsyncpa [#allocation9], 0 }
   0xc   :  { %22 = vsyncpa [#allocation12], 0 }
   0xd   :  { %23 = vsyncpa [#allocation15], 0 }
   0xe   :  { %24 = vsyncpa [#allocation18], 0 }
   0xf   :  { %25 = vsyncpa [#allocation4], 0 }
  0x10   :  { %27 = vsyncpa [#allocation4 + $0x1], 0  ;;  %s3202_s21 = smov 0   ;;  %s3204_s22 = smov 0  }
  0x11   :  { %s3206_s23 = smov 0   ;;  %s3208_s24 = smov 0  }
  0x12 LB: > { %s3116_s25 = smov [#allocation5]   ;;  %s3223_s27 = sadd.s32 4294967295, %s3114_s24   ;;  %s3114_s24 = sphi %s3208_s24, %s3794_s24   ;;  %s3110_s23 = sphi %s3206_s23, %s3793_s23   ;;  %s3106_s22 = sphi %s3204_s22, %s3792_s22   ;;  %s3102_s21 = sphi %s3202_s21, %s3791_s21  }
  0x13   : > { %s333_s26 = sshll.u32 %s3116_s25, 4  ;;  %p2198_p0 = scmp.ge.s32.totalorder %s3114_s24, 1  ;;  %s334_s26 = int_to_ptr.vmem [resolvable:$true] %s333_s26 }
  0x14   : > { %p3747_p1 = scmp.eq.s32.totalorder %s3223_s27, 0  ;;  %p321_p2 = scmp.lt.s32.totalorder %s3114_s24, 3 }
  0x15   : > { %s3117_s29 = smov [#allocation8]   ;;  %s3118_s14 = smov [#allocation11]  }
  0x16   : > { %p3228_p3 = pnand %p2198_p0, %p321_p2  ;;  %s358_s30 = sshll.u32 %s3117_s29, 4  ;;  %s359_s30 = int_to_ptr.vmem [resolvable:$true] %s358_s30 }
  0x17   : > { %s379_s15 = sshll.u32 %s3118_s14, 4  ;;  %s2779_s17 = scalar_lea.vmem %s334_s26, 1792  ;;  %s3241_s15 = int_to_ptr.vmem [resolvable:$true] %s379_s15 }
  0x18   : > { %s3759_s28 = scalar_select %p3228_p3, 1, 0 }
  0x19   : > { %p2575_p5 = pneg %p3228_p3  ;;  %p2780_p8 = scmp.ne.s32.totalorder %s334_s26, %s2779_s17 }
  0x1a   : > { %p2787_p11 = scmp.lt.s32.totalorder %s334_s26, %s334_s26  ;;  %p2788_p12 = scmp.lt.s32.totalorder %s2779_s17, %s2779_s17 }
  0x1b   : > { %p3237_p6 = pnand %p2575_p5, %p3747_p1 }
  0x1c   : > { %p2789_p13 = por %p2788_p12, %p2787_p11 }
  0x1d   : > { %p3245_p7 = pneg %p3237_p6 }
  0x1f   : > { %p2782_p9 = pnand %p2780_p8, %p3245_p7 }
  0x21   : > { %p2783_p10 = pneg %p2782_p9 }
  0x23   : > { %p2790_p0 = pnand %p2789_p13, %p2783_p10 }
  0x25   : > { %2793 = shalt.err (!%p2790_p0)
}
  0x26   : > { %s3745_s18 = smov 64   ;;  %s3749_s19 = smov 4  }
  0x27   : > { %s3762_s1 = sld [smem:[#allocation27_spill]]  ;;  %s2805_s29 = scalar_lea.vmem %s359_s30, 16 }
  0x28   : > { %p2806_p2 = scmp.ne.s32.totalorder %s359_s30, %s2805_s29  ;;  %s2812_s14 = scalar_lea.vmem %s359_s30, 32 }
  0x29   : > { %p2813_p9 = scmp.lt.s32.totalorder %s359_s30, %s359_s30  ;;  %p2814_p10 = scmp.lt.s32.totalorder %s2812_s14, %s2805_s29 }
  0x2a   : > { %p2808_p5 = pnand %p2806_p2, %p3245_p7 }
  0x2b   : > { %p2815_p11 = por %p2814_p10, %p2813_p9 }
  0x2c   : > { %p2809_p8 = pneg %p2808_p5 }
  0x2d   : > { %2578 = dma.hbm_to_vmem [thread:$0]  (!%p3237_p6), %s3762_s1, 1792, %s334_s26, [#allocation6], %s3745_s18, %s3745_s18, %s3749_s19  }
  0x2e   : > { %p2816_p12 = pnand %p2815_p11, %p2809_p8 }
  0x30   : > { %2819 = shalt.err (!%p2816_p12)
}
  0x31   : > { %s3763_s3 = sld [smem:[#allocation29_spill]]  ;;  %s2831_s26 = scalar_lea.vmem %s3241_s15, 256 }
  0x32   : > { %p2832_p13 = scmp.ne.s32.totalorder %s3241_s15, %s2831_s26  ;;  %p2839_p5 = scmp.lt.s32.totalorder %s3241_s15, %s3241_s15 }
  0x33   : > { %p2840_p9 = scmp.lt.s32.totalorder %s2831_s26, %s2831_s26 }
  0x34   : > { %p2834_p0 = pnand %p2832_p13, %p3245_p7 }
  0x35   : > { %p2841_p8 = por %p2840_p9, %p2839_p5 }
  0x36   : > { %p2835_p2 = pneg %p2834_p0 }
  0x37   : > { %2584 = dma.hbm_to_vmem [thread:$0]  (!%p3237_p6), %s3763_s3, 16, %s359_s30, [#allocation9]  }
  0x38   : > { %p2842_p10 = pnand %p2841_p8, %p2835_p2 }
  0x3a   : > { %2845 = shalt.err (!%p2842_p10)
}
  0x3b   : > { %s3764_s5 = sld [smem:[#allocation31_spill]]  ;;  %s3121_s30 = smov [#allocation14]  }
  0x3c   : > { %s405_s25 = sshll.u32 %s3121_s30, 4  ;;  %s3122_s29 = smov [#allocation7]   ;;  %s406_s25 = int_to_ptr.vmem [resolvable:$true] %s405_s25 }
  0x3d   : > { %s347_s14 = sshll.u32 %s3122_s29, 4  ;;  %s2857_s17 = scalar_lea.vmem %s406_s25, 256  ;;  %s348_s14 = int_to_ptr.vmem [resolvable:$true] %s347_s14 }
  0x3e   : > { %p2858_p11 = scmp.ne.s32.totalorder %s406_s25, %s2857_s17  ;;  %p2865_p0 = scmp.lt.s32.totalorder %s406_s25, %s406_s25 }
  0x3f   : > { %p2866_p2 = scmp.lt.s32.totalorder %s2857_s17, %s2857_s17 }
  0x40   : > { %p2860_p12 = pnand %p2858_p11, %p3245_p7 }
  0x41   : > { %2590 = dma.hbm_to_vmem [thread:$0]  (!%p3237_p6), %s3764_s5, 256, %s3241_s15, [#allocation12], %s3745_s18, %s3745_s18, %s3749_s19  }
  0x42   : > { %p2861_p13 = pneg %p2860_p12  ;;  %p2867_p5 = por %p2866_p2, %p2865_p0 }
  0x44   : > { %p2868_p9 = pnand %p2867_p5, %p2861_p13 }
  0x46   : > { %2871 = shalt.err (!%p2868_p9)
}
  0x47   : > { %2596 = dma.hbm_to_vmem [thread:$0]  (!%p3237_p6), %s3738_s7, 256, %s406_s25, [#allocation15], %s3745_s18, %s3745_s18, %s3749_s19  }
  0x48   : > { %s2883_s12 = scalar_lea.vmem %s348_s14, 16  ;;  %s2890_s20 = scalar_lea.vmem %s348_s14, 32 }
  0x49   : > { %p2884_p8 = scmp.ne.s32.totalorder %s348_s14, %s2883_s12  ;;  %p2891_p12 = scmp.lt.s32.totalorder %s348_s14, %s348_s14 }
  0x4a   : > { %p2892_p13 = scmp.lt.s32.totalorder %s2890_s20, %s2883_s12 }
  0x4b   : > { %p2886_p10 = pnand %p2884_p8, %p3245_p7 }
  0x4c   : > { %p2893_p0 = por %p2892_p13, %p2891_p12 }
  0x4d   : > { %p2887_p11 = pneg %p2886_p10 }
  0x4f   : > { %p2894_p2 = pnand %p2893_p0, %p2887_p11 }
  0x51   : > { %2897 = shalt.err (!%p2894_p2)
}
  0x52   : > { %s3765_s2 = sld [smem:[#allocation28_spill]]  ;;  %s3123_s25 = smov [#allocation10]  }
  0x53   : > { %s369_s17 = sshll.u32 %s3123_s25, 4  ;;  %s3124_s15 = smov [#allocation13]   ;;  %s370_s17 = int_to_ptr.vmem [resolvable:$true] %s369_s17 }
  0x54   : > { %s392_s26 = sshll.u32 %s3124_s15, 4  ;;  %s2909_s18 = scalar_lea.vmem %s370_s17, 16  ;;  %s393_s26 = int_to_ptr.vmem [resolvable:$true] %s392_s26 }
  0x55   : > { %p2910_p5 = scmp.ne.s32.totalorder %s370_s17, %s2909_s18  ;;  %s2916_s12 = scalar_lea.vmem %s370_s17, 32 }
  0x56   : > { %p2917_p10 = scmp.lt.s32.totalorder %s370_s17, %s370_s17  ;;  %p2918_p11 = scmp.lt.s32.totalorder %s2916_s12, %s2909_s18 }
  0x57   : > { %p2912_p9 = pnand %p2910_p5, %p3245_p7 }
  0x58   : > { %2581 = dma.hbm_to_vmem [thread:$0]  (!%p3237_p6), %s3765_s2, 16, %s348_s14, [#allocation6]  }
  0x59   : > { %p2913_p8 = pneg %p2912_p9  ;;  %p2919_p12 = por %p2918_p11, %p2917_p10 }
  0x5b   : > { %p2920_p13 = pnand %p2919_p12, %p2913_p8 }
  0x5d   : > { %2923 = shalt.err (!%p2920_p13)
}
  0x5e   : > { %s3766_s4 = sld [smem:[#allocation30_spill]]  ;;  %s2935_s30 = scalar_lea.vmem %s393_s26, 256 }
  0x5f   : > { %p2936_p0 = scmp.ne.s32.totalorder %s393_s26, %s2935_s30  ;;  %p2943_p9 = scmp.lt.s32.totalorder %s393_s26, %s393_s26 }
  0x60   : > { %p2944_p4 = scmp.lt.s32.totalorder %s2935_s30, %s2935_s30 }
  0x61   : > { %p2938_p2 = pnand %p2936_p0, %p3245_p7 }
  0x62   : > { %p2945_p1 = por %p2944_p4, %p2943_p9 }
  0x63   : > { %p2939_p5 = pneg %p2938_p2 }
  0x64   : > { %2587 = dma.hbm_to_vmem [thread:$0]  (!%p3237_p6), %s3766_s4, 16, %s370_s17, [#allocation9]  }
  0x65   : > { %p2946_p3 = pnand %p2945_p1, %p2939_p5 }
  0x67   : > { %2949 = shalt.err (!%p2946_p3)
}
  0x68   : > { %s3767_s18 = smov 64   ;;  %s3768_s6 = sld [smem:[#allocation32_spill]] }
  0x69   : > { %s3125_s17 = smov [#allocation16]   ;;  %s3126_s12 = smov [#allocation17]  }
  0x6a   : > { %s418_s15 = sshll.u32 %s3125_s17, 4  ;;  %s437_s20 = sshll.u32 %s3126_s12, 4  ;;  %s419_s15 = int_to_ptr.vmem [resolvable:$true] %s418_s15  ;;  %s438_s20 = int_to_ptr.vmem [resolvable:$true] %s437_s20 }
  0x6b   : > { %s2961_s14 = scalar_lea.vmem %s419_s15, 1792  ;;  %p2969_p4 = scmp.lt.s32.totalorder %s419_s15, %s419_s15 }
  0x6c   : > { %p2962_p8 = scmp.ne.s32.totalorder %s419_s15, %s2961_s14  ;;  %p2970_p10 = scmp.lt.s32.totalorder %s2961_s14, %s2961_s14 }
  0x6e   : > { %2593 = dma.hbm_to_vmem [thread:$0]  (!%p3237_p6), %s3768_s6, 256, %s393_s26, [#allocation12], %s3767_s18, %s3767_s18, %s3749_s19  }
  0x6f   : > { %p2964_p1 = pnand %p2962_p8, %p3245_p7  ;;  %p2971_p11 = por %p2970_p10, %p2969_p4 }
  0x71   : > { %p2965_p3 = pneg %p2964_p1 }
  0x73   : > { %p2972_p12 = pnand %p2971_p11, %p2965_p3 }
  0x75   : > { %2975 = shalt.err (!%p2972_p12)
}
  0x76   : > { %2599 = dma.hbm_to_vmem [thread:$0]  (!%p3237_p6), %s3739_s8, 1792, %s419_s15, [#allocation15], %s3767_s18, %s3767_s18, %s3749_s19  }
  0x77   : > { %s2987_s29 = scalar_lea.vmem %s438_s20, 112  ;;  %s2994_s25 = scalar_lea.vmem %s438_s20, 128 }
  0x78   : > { %p2988_p13 = scmp.ne.s32.totalorder %s438_s20, %s2987_s29  ;;  %p2995_p5 = scmp.lt.s32.totalorder %s438_s20, %s438_s20 }
  0x79   : > { %p2996_p9 = scmp.lt.s32.totalorder %s2994_s25, %s2987_s29 }
  0x7a   : > { %p2990_p0 = pnand %p2988_p13, %p3245_p7 }
  0x7b   : > { %p2997_p8 = por %p2996_p9, %p2995_p5 }
  0x7c   : > { %p2991_p2 = pneg %p2990_p0 }
  0x7e   : > { %p2998_p1 = pnand %p2997_p8, %p2991_p2 }
  0x80   : > { %3001 = shalt.err (!%p2998_p1)
}
  0x81   : > { %s3127_s17 = smov 16   ;;  %s3128_s16 = smov 1  }
  0x82   : > { %2602 = dma.hbm_to_vmem [thread:$0]  (!%p3237_p6), %s3742_s11, 112, %s438_s20, [#allocation18], %s3127_s17, %s3127_s17, %s3128_s16  }
  0x83   : > { %s2197_s14 = sadd.s32 4294967294, %s3114_s24   ;;  %s3334_s26 = sadd.s32 1, %s3114_s24  }
  0x84   : > { %s40_s30 = sadd.s32 1, %s3110_s23  ;;  %s37_s29 = ssub.s32 %s3114_s24, %s3334_s26 }
  0x85   : > { %p47_p7 = scmp.ne.s32.totalorder %s3110_s23, %s3106_s22  ;;  %p38_p3 = scmp.eq.s32.totalorder %s37_s29, 0 }
  0x86   : > { %p48_p4 = scmp.eq.s32.totalorder %s3114_s24, 0  ;;  %p53_p10 = scmp.ne.s32.totalorder %s3106_s22, %s3102_s21 }
  0x87   : > { %p308_p11 = scmp.eq.s32.totalorder %s3223_s27, 1  ;;  %p3769_p13 = scmp.eq.s32.totalorder %s3223_s27, 0 }
  0x88   : > { %s3346_s25 = scalar_select %p38_p3, %s3110_s23, %s40_s30  }
  0x89   : > { %p49_p12 = por %p48_p4, %p47_p7  ;;  %p3350_p0 = por %p3769_p13, %p53_p10 }
  0x8a   : > { %p3354_p6 = por %p308_p11, %p47_p7  ;;  %p314_p2 = scmp.eq.s32.totalorder %s2197_s14, 1 }
  0x8b   : > { %s3770_s13 = scalar_select %p3350_p0, 1, 0 }
  0x8c   : > { %s3771_s20 = scalar_select %p3354_p6, 1, 0 }
  0x8d   : > { %p2620_p5 = scmp.lt.s32.totalorder %s3114_s24, 2  ;;  %s451_s17 = sand.u32 1, %s3110_s23  }
  0x8e   : > { %p3360_p9 = por %p314_p2, %p53_p10  ;;  %s2533_s15 = smul.u32 28, %s451_s17 }
  0x8f   : > { %s2209_s12 = sshll.u32 %s3114_s24, 6  ;;  %p3370_p8 = pnand %p2620_p5, %p49_p12 }
  0x90   : > { %s3772_s16 = scalar_select %p3360_p9, 1, 0 }
  0x91   : > { %s3368_s19 = scalar_lea.hbm %s3731_s0, %s2209_s12  ;;  %s455_s14 = scalar_lea.vmem [#allocation2], %s2533_s15 }
  0x92   : > { %s461_s2 = sshll.u32 %s455_s14, 4  ;;  %s3376_s3 = scalar_lea.sflag [#allocation3], %s451_s17  ;;  %s3374_s2 = int_to_ptr.vmem [resolvable:$true] %s461_s2 }
  0x93   : > { %s3002_s4 = scalar_lea.hbm %s3368_s19, 448  ;;  %p3004_p7 = pneg %p3370_p8 }
  0x94   : > { %p3003_p1 = scmp.ne.s32.totalorder %s3368_s19, %s3002_s4  ;;  %s3007_s29 = scalar_lea.hbm %s3731_s0, 896 }
  0x95   : > { %p3008_p10 = scmp.lt.s32.totalorder %s3368_s19, %s3731_s0  ;;  %p3009_p11 = scmp.lt.s32.totalorder %s3007_s29, %s3002_s4 }
  0x96   : > { %p3005_p3 = pnand %p3004_p7, %p3003_p1 }
  0x97   : > { %p3010_p12 = por %p3009_p11, %p3008_p10 }
  0x98   : > { %p3006_p4 = pneg %p3005_p3 }
  0x9a   : > { %p3011_p13 = pnand %p3010_p12, %p3006_p4 }
  0x9c   : > { %3014 = shalt.err (!%p3011_p13)
}
  0x9d   : > { %s3015_s17 = scalar_lea.vmem %s3374_s2, 448  ;;  %s3129_s15 = smov [#allocation2]  }
  0x9e   : > { %p3016_p2 = scmp.ne.s32.totalorder %s3374_s2, %s3015_s17  ;;  %s3020_s14 = sshll.u32 %s3129_s15, 4  ;;  %s3021_s14 = int_to_ptr.vmem [resolvable:$false] %s3020_s14 }
  0x9f   : > { %s3022_s12 = scalar_lea.vmem %s3021_s14, 896  ;;  %p3023_p3 = scmp.lt.s32.totalorder %s3374_s2, %s3021_s14 }
  0xa0   : > { %p3018_p5 = pnand %p3016_p2, %p3004_p7  ;;  %p3024_p9 = scmp.lt.s32.totalorder %s3022_s12, %s3015_s17 }
  0xa2   : > { %p3019_p1 = pneg %p3018_p5  ;;  %p3025_p6 = por %p3024_p9, %p3023_p3 }
  0xa4   : > { %p3026_p0 = pnand %p3025_p6, %p3019_p1 }
  0xa6   : > { %3029 = shalt.err (!%p3026_p0)
}
  0xa7   : > { %s3130_s4 = smov 128   ;;  %s3774_s5 = smov 4  }
  0xa8   : > { %2606 = dma.hbm_to_vmem [thread:$0]  (!%p3370_p8), %s3368_s19, 448, %s3374_s2, %s3376_s3, %s3130_s4, %s3767_s18, %s3774_s5  }
  0xa9   : > { %p3775_p7 = scmp.ne.s32.totalorder %s3759_s28, 0 }
  0xaa   : > { %s3402_s6 = sand.u32 (!%p3775_p7), 1, %s3106_s22   ;;  %p3776_p0 = scmp.ne.s32.totalorder (!%p3775_p7), %s3770_s13, 0 }
  0xab   : > { %473 = sbr.rel (%p3775_p7) target bundleno = 1069 (0x42d), region = 68  ;;  %s476_s29 = scalar_lea.sflag (!%p3775_p7), [#allocation3], %s3402_s6 }
  0xac   : > { %s2534_s30 = smul.u32 (!%p3775_p7), 28, %s3402_s6 }
  0xae   : > { %s3406_s17 = scalar_lea.vmem (!%p3775_p7), [#allocation2], %s2534_s30 }
  0xb0   : > { %3073 = dma.done.wait (%p3776_p0), %s476_s29, 448  }
  0xb1   : > { %3075 = vsyncadd (%p3776_p0), %s476_s29, 4294966848  ;;  %p3777_p6 = scmp.eq.s32.totalorder %s3223_s27, 0 }
  0xb3   : > { %3077 = dma.done.wait (%p3777_p6), [#allocation6], 1808   ;;  %p3778_p9 = pmov %p3777_p6 }
  0xb4   : > { %p3779_p8 = pmov %p3777_p6 }
  0xb5   : > { %3079 = vsyncadd (%p3778_p9), [#allocation6], 4294965488 }
  0xb6   : > { %3081 = dma.done.wait (%p3779_p8), [#allocation9], 32   ;;  %p3780_p4 = pmov %p3777_p6 }
  0xb8   : > { %3083 = vsyncadd (%p3780_p4), [#allocation9], 4294967264  ;;  %p3781_p10 = pmov %p3780_p4 }
  0xb9   : > { %p3782_p11 = pmov %p3780_p4 }
  0xba   : > { %3085 = dma.done.wait (%p3781_p10), [#allocation12], 512  }
  0xbb   : > { %3087 = vsyncadd (%p3782_p11), [#allocation12], 4294966784  ;;  %p3783_p12 = pmov %p3780_p4 }
  0xbc   : > { %p3784_p13 = pmov %p3780_p4 }
  0xbd   : > { %3089 = dma.done.wait (%p3783_p12), [#allocation15], 2048  }
  0xbe   : > { %3091 = vsyncadd (%p3784_p13), [#allocation15], 4294965248  ;;  %p3785_p2 = pmov %p3780_p4 }
  0xc0   : > { %3093 = dma.done.wait (%p3785_p2), [#allocation18], 112   ;;  %p3786_p5 = pmov %p3785_p2 }
  0xc1   : > { %v3131_v0 = vmov 0.0   ;;  %vm3132_vm0 = vmmov 0   ;;  %v2682_v1 = vld [vmem:[#allocation5 + $0x18] sm:$0xff]   ;;  %v2683_v2 = vld [vmem:[#allocation5 + $0x8] sm:$0xff]   ;;  %v2684_v3 = vld [vmem:[#allocation5 + $0x10] sm:$0xff]   ;;  %vm585_vm1 = vcmask 261120  }
  0xc2   : > { %3095 = vsyncadd (%p3786_p5), [#allocation18], 4294967184  ;;  %2389 = vmatprep.subr.bf16.mxu0 %v3131_v0  ;;  %2397 = vmatprep.subr.bf16.mxu1 %v3131_v0  ;;  %v2685_v4 = vld [vmem:[#allocation5] sm:$0xff]   ;;  %v3441_v5 = vld [vmem:[%s3406_s17 + $0x4] sm:$0xf]  ;;  %s2220_s5 = sshll.u32 %s3402_s6, 4 }
  0xc3   : > { %2393 = vmatprep.mubr.msk.bf16.mxu0 %vm3132_vm0, %v3131_v0  ;;  %2401 = vmatprep.mubr.msk.bf16.mxu1 %vm3132_vm0, %v3131_v0  ;;  %v3444_v6 = vld [vmem:[%s3406_s17] sm:$0xf]  ;;  %v2688_v8 = vld [vmem:[#allocation5 + $0x38] sm:$0xff]   ;;  %v2690_v10 = vld [vmem:[#allocation5 + $0x30] sm:$0xff]   ;;  %s555_s1 = scalar_lea.vmem [#allocation19], %s2220_s5  ;;  %s3134_s2 = smov 64  }
  0xc4   : > { %2390 = vmatpush3.bf16.msra.mxu0 %v2682_v1  ;;  %2398 = vmatpush3.bf16.msra.mxu1 %v2683_v2  ;;  %v2687_v7 = vld [vmem:[#allocation5 + $0x28] sm:$0xff]   ;;  %v2689_v9 = vld [vmem:[#allocation5 + $0x20] sm:$0xff]   ;;  %v3462_v12 = vld [vmem:[%s3406_s17 + $0xc] sm:$0xf]  ;;  %v2249_v21 = vcombine.low %v3444_v6, %v3441_v5  ;;  %s3135_s3 = smov 96   ;;  %vm1541_vm2 = vcmask 523520  }
  0xc5   : > { %2391 = vmatprep.subr.bf16.mxu0 %v3131_v0  ;;  %2399 = vmatprep.subr.bf16.mxu1 %v3131_v0  ;;  %v3457_v11 = vld [vmem:[%s3406_s17 + $0x8] sm:$0xf]  ;;  %v2693_v14 = vld [vmem:[#allocation5 + $0x58] sm:$0xff]   ;;  %v2694_v15 = vld [vmem:[#allocation5 + $0x40] sm:$0xff]   ;;  %vm1639_vm3 = vcmask 785920   ;;  %vm1737_vm4 = vcmask 1048320  }
  0xc6   : > { %v2692_v13 = vld [vmem:[#allocation5 + $0x48] sm:$0xff]   ;;  %v2695_v16 = vld [vmem:[#allocation5 + $0x50] sm:$0xff]   ;;  %v3480_v19 = vld [vmem:[%s3406_s17 + $0x14] sm:$0xf]  ;;  %v2250_v25 = vcombine.low %v3457_v11, %v3462_v12  ;;  %s2331_s28 = sshll.u32 %s3223_s27, 8  ;;  %s2041_s19 = sshll.u32 %s555_s1, 4  ;;  %s2042_s19 = int_to_ptr.vmem [resolvable:$true] %s2041_s19 }
  0xc7   : > { %v3475_v17 = vld [vmem:[%s3406_s17 + $0x10] sm:$0xf]  ;;  %v2696_v18 = vld [vmem:[#allocation5 + $0x68] sm:$0xff]   ;;  %v2697_v20 = vld [vmem:[#allocation5 + $0x60] sm:$0xff]   ;;  %s3787_s15 = sld [smem:[#allocation33_spill]]  ;;  %s2027_s12 = scalar_lea.sflag [#allocation4], %s3402_s6 }
  0xc8   : > { %2392 = vmatpush3.bf16.msra.mxu0 %v2684_v3  ;;  %2400 = vmatpush3.bf16.msra.mxu1 %v2685_v4  ;;  %v3496_v22 = vld [vmem:[%s3406_s17 + $0x18] sm:$0xf]  ;;  %v2698_v23 = vld [vmem:[#allocation13 + $0x8] sm:$0xff]   ;;  %v2699_v24 = vld [vmem:[#allocation13] sm:$0xff]   ;;  %v2251_v27 = vcombine.low %v3475_v17, %v3480_v19  ;;  %s3133_s17 = smov 32   ;;  %s3030_s4 = scalar_lea.vmem %s2042_s19, 256 }
  0xc9   : > { %2405 = vmatprep.subr.bf16.mxu0 %v3131_v0  ;;  %2413 = vmatprep.subr.bf16.mxu1 %v3131_v0  ;;  %v2700_v26 = vld [vmem:[#allocation11 + $0x8] sm:$0xff]   ;;  %v2252_v28 = vcombine.low %v3496_v22, %v3496_v22  ;;  %v2703_v29 = vld [vmem:[#allocation11] sm:$0xff]   ;;  %v2704_v30 = vld [vmem:[#allocation16 + $0x8] sm:$0xff]   ;;  %p3031_p1 = scmp.ne.s32.totalorder %s2042_s19, %s3030_s4  ;;  %p3788_p3 = scmp.ne.s32.totalorder %s3771_s20, 0 }
  0xca   : > { %v2705_v31 = vld [vmem:[#allocation16] sm:$0xff]   ;;  %v2706_v32 = vld [vmem:[#allocation16 + $0x28] sm:$0xff]   ;;  %v2709_v42 = vld [vmem:[#allocation14 + $0x8] sm:$0xff]   ;;  %s3136_s5 = smov [#allocation19]  }
  0xcb   : > { %2394 = vmatmul.mubr.msk.bf16.vlgmr.msra.gmra.mxu0 %vm585_vm1, %v3441_v5  ;;  %2402 = vmatmul.mubr.msk.bf16.vlgmr.msra.gmra.mxu1 %vm585_vm1, %v3444_v6  ;;  %v2707_v33 = vld [vmem:[#allocation16 + $0x20] sm:$0xff]   ;;  %v2708_v37 = vld [vmem:[#allocation16 + $0x48] sm:$0xff]   ;;  %p3032_p7 = pnand %p3031_p1, %p3788_p3  ;;  %s3034_s30 = sshll.u32 %s3136_s5, 4  ;;  %s3035_s30 = int_to_ptr.vmem [resolvable:$false] %s3034_s30 }
  0xcc   : > { %2406 = vmatpush3.bf16.msra.mxu0 %v2687_v7  ;;  %2414 = vmatpush3.bf16.msra.mxu1 %v2688_v8  ;;  %v2710_v43 = vld [vmem:[#allocation16 + $0x40] sm:$0xff]   ;;  %v2242_v4 = vld [vmem:[#allocation7] ss:$0 sm:$0xff]  ;;  %s3036_s27 = scalar_lea.vmem %s3035_s30, 512  ;;  %p3037_p6 = scmp.lt.s32.totalorder %s2042_s19, %s3035_s30 }
  0xcd   : > { %2407 = vmatprep.subr.bf16.mxu0 %v3131_v0  ;;  %2415 = vmatprep.subr.bf16.mxu1 %v3131_v0  ;;  %s3694_s14 = scalar_lea.hbm %s3787_s15, %s2331_s28  ;;  %p3033_p0 = pneg %p3032_p7 }
  0xce   : > { %2409 = vmatprep.mubr.msk.bf16.mxu0 %vm3132_vm0, %v3131_v0  ;;  %2417 = vmatprep.mubr.msk.bf16.mxu1 %vm3132_vm0, %v3131_v0  ;;  %p3038_p9 = scmp.lt.s32.totalorder %s3036_s27, %s3030_s4 }
  0xd0   : > { %2408 = vmatpush3.bf16.msra.mxu0 %v2689_v9  ;;  %2416 = vmatpush3.bf16.msra.mxu1 %v2690_v10  ;;  %p3039_p8 = por %p3038_p9, %p3037_p6 }
  0xd1   : > { %2421 = vmatprep.subr.bf16.mxu0 %v3131_v0  ;;  %2429 = vmatprep.subr.bf16.mxu1 %v3131_v0 }
  0xd2   : > { %p3040_p4 = pnand %p3039_p8, %p3033_p0 }
  0xd3   : > { %2410 = vmatmul.mubr.msk.bf16.vlgmr.msra.gmra.mxu0 %vm585_vm1, %v3457_v11  ;;  %2418 = vmatmul.mubr.msk.bf16.vlgmr.msra.gmra.mxu1 %vm585_vm1, %v3462_v12 }
  0xd4   : > { %2422 = vmatpush3.bf16.msra.mxu0 %v2692_v13  ;;  %2430 = vmatpush3.bf16.msra.mxu1 %v2693_v14 }
  0xd5   : > { %2423 = vmatprep.subr.bf16.mxu0 %v3131_v0  ;;  %2431 = vmatprep.subr.bf16.mxu1 %v3131_v0 }
  0xd6   : > { %2425 = vmatprep.mubr.msk.bf16.mxu0 %vm3132_vm0, %v3131_v0  ;;  %2433 = vmatprep.mubr.msk.bf16.mxu1 %vm3132_vm0, %v3131_v0 }
  0xd8   : > { %2424 = vmatpush3.bf16.msra.mxu0 %v2694_v15  ;;  %2432 = vmatpush3.bf16.msra.mxu1 %v2695_v16 }
  0xd9   : > { %2437 = vmatprep.subr.bf16.mxu0 %v3131_v0  ;;  %2445 = vmatprep.subr.bf16.mxu1 %v3131_v0 }
  0xdb   : > { %2426 = vmatmul.mubr.msk.bf16.vlgmr.msra.gmra.mxu0 %vm585_vm1, %v3475_v17  ;;  %2434 = vmatmul.mubr.msk.bf16.vlgmr.msra.gmra.mxu1 %vm585_vm1, %v3480_v19 }
  0xdc   : > { %2438 = vmatpush3.bf16.msra.mxu0 %v2696_v18  ;;  %2441 = vmatprep.mubr.msk.bf16.mxu0 %vm3132_vm0, %v3131_v0 }
  0xdd   : > { %2439 = vmatprep.subr.bf16.mxu0 %v3131_v0  ;;  %2449 = vmatprep.mubr.msk.bf16.mxu1 %vm3132_vm0, %v3131_v0 }
  0xde   : > { %2446 = vmatpush3.bf16.msra.mxu1 %v2700_v26 }
  0xdf   : > { %2447 = vmatprep.subr.bf16.mxu1 %v3131_v0 }
  0xe0   : > { %2440 = vmatpush3.bf16.msra.mxu0 %v2697_v20  ;;  %v2245_v20 = vld [vmem:[#allocation10] ss:$0 sm:$0xff] }
  0xe1   : > { %2453 = vmatprep.subr.bf16.mxu0 %v2698_v23 }
  0xe2   : > { %2448 = vmatpush3.bf16.msra.mxu1 %v2703_v29 }
  0xe3   : > { %2442 = vmatmul.mubr.msk.bf16.vlgmr.msra.gmra.mxu0 %vm585_vm1, %v3496_v22  ;;  %2465 = vmatprep.subr.bf16.mxu1 %v2709_v42 }
  0xe4   : > { %2457 = vmatprep.mubr.msk.bf16.mxu0 %vm585_vm1, %v2249_v21  ;;  %2454 = vmatpush3.bf16.msra.mxu0 %v2698_v23 }
  0xe5   : > { %2455 = vmatprep.subr.bf16.mxu0 %v2699_v24 }
  0xe8   : > { %2456 = vmatpush3.bf16.msra.mxu0 %v2699_v24 }
  0xe9   : > { %2477 = vmatprep.subr.bf16.mxu0 %v3131_v0 }
  0xeb   : > { %2458 = vmatmul.mubr.msk.bf16.vlgmr.msra.gmra.mxu0 %vm585_vm1, %v2250_v25 }
  0xec   : > { %2461 = vmatprep.mubr.msk.bf16.mxu0 %vm585_vm1, %v2251_v27  ;;  %2478 = vmatpush3.bf16.msra.mxu0 %v2704_v30 }
  0xed   : > { %2479 = vmatprep.subr.bf16.mxu0 %v3131_v0 }
  0xf0   : > { %2480 = vmatpush3.bf16.msra.mxu0 %v2705_v31 }
  0xf1   : > { %2493 = vmatprep.subr.bf16.mxu0 %v3131_v0 }
  0xf3   : > { %2462 = vmatmul.mubr.msk.bf16.gmra.mxu0 %vm585_vm1, %v2252_v28 }
  0xf4   : > { %2481 = vmatprep.mubr.msk.bf16.mxu0 %vm3132_vm0, %v3131_v0 }
  0xfb   : > { %2482 = vmatmul.mubr.msk.bf16.vlgmr.msra.gmra.mxu0 %vm585_vm1, %v3444_v6 }
  0xfc   : > { %2497 = vmatprep.mubr.msk.bf16.mxu0 %vm3132_vm0, %v3131_v0  ;;  %2494 = vmatpush3.bf16.msra.mxu0 %v2706_v32  ;;  %v2712_v32 = vld [vmem:[#allocation16 + $0x68] sm:$0xff]  }
  0xfd   : > { %2495 = vmatprep.subr.bf16.mxu0 %v3131_v0 }
 0x100   : > { %2496 = vmatpush3.bf16.msra.mxu0 %v2707_v33  ;;  %v2711_v33 = vld [vmem:[#allocation14] sm:$0xff]  }
 0x101   : > { %2509 = vmatprep.subr.bf16.mxu0 %v3131_v0 }
 0x103   : > { %2498 = vmatmul.mubr.msk.bf16.vlgmr.msra.gmra.mxu0 %vm585_vm1, %v3457_v11 }
 0x104   : > { %2510 = vmatpush3.bf16.msra.mxu0 %v2708_v37  ;;  %2513 = vmatprep.mubr.msk.bf16.mxu0 %vm3132_vm0, %v3131_v0 }
 0x105   : > { %2511 = vmatprep.subr.bf16.mxu0 %v3131_v0 }
 0x108   : > { %2512 = vmatpush3.bf16.msra.mxu0 %v2710_v43 }
 0x109   : > { %2525 = vmatprep.subr.bf16.mxu0 %v3131_v0 }
 0x10b   : > { %2514 = vmatmul.mubr.msk.bf16.vlgmr.msra.gmra.mxu0 %vm585_vm1, %v3475_v17  ;;  %v2244_v17 = vld [vmem:[#allocation8] ss:$0 sm:$0xff] }
 0x10c   : > { %2529 = vmatprep.mubr.msk.bf16.mxu0 %vm3132_vm0, %v3131_v0  ;;  %2526 = vmatpush3.bf16.msra.mxu0 %v2712_v32 }
 0x10d   : > { %2527 = vmatprep.subr.bf16.mxu0 %v3131_v0 }
 0x18b   : > { %v623_v34 = vpop.f32.mrf.mxu0  ;;  %v678_v35 = vpop.f32.mrf.mxu1 }
 0x18c   : > { %v679_v48 = vadd.f32 %v678_v35, %v623_v34  ;;  %v2713_v34 = vld [vmem:[#allocation16 + $0x60] sm:$0xff]  }
 0x18d   : > { %v2395_v36 = vpop.f32.mrf.mxu0  ;;  %v2403_v38 = vpop.f32.mrf.mxu1  ;;  %2528 = vmatpush3.bf16.msra.mxu0 %v2713_v34 }
 0x18f   : > { %v626_v39 = vpop.f32.mrf.mxu0  ;;  %v681_v40 = vpop.f32.mrf.mxu1 }
 0x190   : > { %2530 = vmatmul.mubr.msk.bf16.vlgmr.msra.gmra.mxu0 %vm585_vm1, %v3496_v22 }
 0x191   : > { %v2396_v41 = vpop.f32.mrf.mxu0  ;;  %v2404_v44 = vpop.f32.mrf.mxu1 }
 0x193   : > { %v738_v45 = vpop.f32.mrf.mxu0  ;;  %v799_v46 = vpop.f32.mrf.mxu1 }
 0x194   : > { %v744_v51 = vadd.f32 %v738_v45, %v679_v48 }
 0x195   : > { %v2411_v47 = vpop.f32.mrf.mxu0  ;;  %v2419_v49 = vpop.f32.mrf.mxu1 }
 0x196   : > { %v805_v56 = vadd.f32 %v799_v46, %v744_v51 }
 0x197   : > { %v741_v50 = vpop.f32.mrf.mxu0  ;;  %v802_v52 = vpop.f32.mrf.mxu1 }
 0x199   : > { %v2412_v53 = vpop.f32.mrf.mxu0  ;;  %v2420_v54 = vpop.f32.mrf.mxu1 }
 0x19b   : > { %v860_v55 = vpop.f32.mrf.mxu0  ;;  %v921_v57 = vpop.f32.mrf.mxu1 }
 0x19c   : > { %v866_v59 = vadd.f32 %v860_v55, %v805_v56  ;;  %v2714_v56 = vld [vmem:[#allocation16 + $0x18] sm:$0xff]  }
 0x19d   : > { %v2427_v58 = vpop.f32.mrf.mxu0  ;;  %v2435_v60 = vpop.f32.mrf.mxu1 }
 0x19e   : > { %v927_v1 = vadd.f32 %v921_v57, %v866_v59 }
 0x19f   : > { %v863_v61 = vpop.f32.mrf.mxu0  ;;  %v924_v62 = vpop.f32.mrf.mxu1 }
 0x1a0   : > { %v2715_v61 = vld [vmem:[#allocation16 + $0x10] sm:$0xff]  }
 0x1a1   : > { %v2428_v63 = vpop.f32.mrf.mxu0  ;;  %v2436_v2 = vpop.f32.mrf.mxu1 }
 0x1a2   : > { %v2717_v2 = vld [vmem:[#allocation16 + $0x30] sm:$0xff]  }
 0x1a3   : > { %v982_v3 = vpop.f32.mrf.mxu0 }
 0x1a4   : > { %v988_v6 = vadd.f32 %v982_v3, %v927_v1  ;;  %v2716_v1 = vld [vmem:[#allocation16 + $0x38] sm:$0xff]  }
 0x1a5   : > { %v2443_v7 = vpop.f32.mrf.mxu0  ;;  %v2718_v3 = vld [vmem:[#allocation16 + $0x58] sm:$0xff]  }
 0x1a6   : > { %v996_v8 = vadd.f32 %v2242_v4, %v988_v6  ;;  %v2719_v4 = vld [vmem:[#allocation16 + $0x50] sm:$0xff]  }
 0x1a7   : > { %v985_v9 = vpop.f32.mrf.mxu0 }
 0x1a8   : > { %v2243_v10 = vmul.f32 -1.702, %v996_v8 }
 0x1a9   : > { %v2444_v11 = vpop.f32.mrf.mxu0 }
 0x1aa   : > { %v999_v13 = vmul.f32 1.442695, %v2243_v10 }
 0x1ab   : > { %v2459_v25 = vpop.f32.mrf.mxu0 }
 0x1ac   : > { %2720 = vpow2.f32 %v999_v13 }
 0x1ad   : > { %v1161_v26 = vpop.f32.mrf.mxu0 }
 0x1af   : > { %v2460_v27 = vpop.f32.mrf.mxu0 }
 0x1b1   : > { %v1164_v28 = vpop.f32.mrf.mxu0 }
 0x1b3   : > { %v2463_v29 = vpop.f32.mrf.mxu0 }
 0x1b5   : > { %v1177_v30 = vpop.f32.mrf.mxu0 }
 0x1b7   : > { %v2464_v31 = vpop.f32.mrf.mxu0 }
 0x1b9   : > { %v2721_v14 = vpop.eup %2720  ;;  %v1180_v35 = vpop.f32.mrf.mxu0 }
 0x1ba   : > { %v1001_v15 = vadd.f32 1.0, %v2721_v14 }
 0x1bb   : > { %v3537_v36 = vpop.f32.mrf.mxu0 }
 0x1bc   : > { %2722 = vrcp.f32 %v1001_v15 }
 0x1bd   : > { %v2483_v37 = vpop.f32.mrf.mxu0 }
 0x1bf   : > { %v1416_v38 = vpop.f32.mrf.mxu0 }
 0x1c0   : > { %v2273_v38 = vld [vmem:[%s3740_s9 + $0x1] ss:$0 sm:$0xff] }
 0x1c1   : > { %v2484_v39 = vpop.f32.mrf.mxu0 }
 0x1c3   : > { %v3539_v40 = vpop.f32.mrf.mxu0 }
 0x1c5   : > { %v2499_v41 = vpop.f32.mrf.mxu0 }
 0x1c9   : > { %v2723_v16 = vpop.eup %2722 }
 0x1ca   : > { %v1004_v18 = vmul.f32 %v2723_v16, %v996_v8 }
 0x1cc   : > { %v1012_v21 = vmul.f32 %v2244_v17, %v1004_v18 }
 0x1ce   : > { %v1020_v23 = vadd.f32 %v2245_v20, %v1012_v21 }
 0x1d0   : > { %v1021_v24 = vpack.c.bf16 %v1020_v23, %v1020_v23  ;;  %v2282_v23 = vld [vmem:[%s3740_s9 + $0x2] ss:$0 sm:$0xff] }
 0x1d2   : > { %2450 = vmatmul.mubr.msk.bf16.vlgmr.msra.gmra.mxu1 %vm585_vm1, %v1021_v24  ;;  %v2300_v24 = vld [vmem:[%s3740_s9 + $0x4] ss:$0 sm:$0xff] }
 0x1d3   : > { %2466 = vmatpush3.bf16.msra.mxu1 %v2709_v42  ;;  %v1605_v42 = vpop.f32.mrf.mxu0 }
 0x1d4   : > { %2467 = vmatprep.subr.bf16.mxu1 %v2711_v33 }
 0x1d5   : > { %v2500_v43 = vpop.f32.mrf.mxu0 }
 0x1d7   : > { %2468 = vmatpush3.bf16.msra.mxu1 %v2711_v33  ;;  %v3541_v44 = vpop.f32.mrf.mxu0  ;;  %v3588_v33 = vadd.f32 %v2282_v23, %v3539_v40 }
 0x1d8   : > { %2485 = vmatprep.subr.bf16.mxu1 %v3131_v0  ;;  %v3598_v39 = vadd.f32 %v2300_v24, %v3541_v44  ;;  %v2291_v44 = vld [vmem:[%s3740_s9 + $0x3] ss:$0 sm:$0xff] }
 0x1d9   : > { %v2515_v45 = vpop.f32.mrf.mxu0 }
 0x1db   : > { %v1801_v46 = vpop.f32.mrf.mxu0 }
 0x1dd   : > { %v2516_v47 = vpop.f32.mrf.mxu0 }
 0x292   : > { %v1075_v48 = vpop.f32.mrf.mxu1 }
 0x293   : > { %v1195_v49 = vmul.f32 %v1177_v30, %v1075_v48  ;;  %v1196_v50 = vmul.f32 %v1180_v35, %v1075_v48  ;;  %v1191_v22 = vmul.f32 %v1161_v26, %v1075_v48  ;;  %v1192_v51 = vmul.f32 %v1164_v28, %v1075_v48 }
 0x294   : > { %v2451_v52 = vpop.f32.mrf.mxu1  ;;  %v1193_v53 = vmul.f32 %v2459_v25, %v1075_v48  ;;  %v1194_v54 = vmul.f32 %v2460_v27, %v1075_v48  ;;  %v1197_v62 = vmul.f32 %v2463_v29, %v1075_v48 }
 0x295   : > { %v1198_v55 = vpack.c.bf16 %v1192_v51, %v1191_v22  ;;  %v1200_v59 = vpack.c.bf16 %v1196_v50, %v1195_v49  ;;  %v2286_v49 = vmul.f32 -1.702, %v3588_v33  ;;  %v2304_v50 = vmul.f32 -1.702, %v3598_v39  ;;  %v2318_v52 = vld [vmem:[%s3740_s9 + $0x6] ss:$0 sm:$0xff] }
 0x296   : > { %v1078_v57 = vpop.f32.mrf.mxu1  ;;  %v1199_v58 = vpack.c.bf16 %v1194_v54, %v1193_v53  ;;  %v1201_v63 = vpack.c.bf16 %v1197_v62, %v1197_v62 }
 0x297   : > { %2469 = vmatprep.mubr.msk.bf16.mxu1 %vm585_vm1, %v1198_v55  ;;  %v1610_v57 = vmul.f32 1.442695, %v2286_v49 }
 0x298   : > { %v2452_v60 = vpop.f32.mrf.mxu1  ;;  %2470 = vmatmul.mubr.msk.bf16.vlgmr.msra.gmra.mxu1 %vm585_vm1, %v1199_v58 }
 0x299   : > { %2473 = vmatprep.mubr.msk.bf16.mxu1 %vm585_vm1, %v1200_v59  ;;  %2486 = vmatpush3.bf16.msra.mxu1 %v2714_v56  ;;  %v1806_v60 = vmul.f32 1.442695, %v2304_v50 }
 0x29a   : > { %2487 = vmatprep.subr.bf16.mxu1 %v3131_v0 }
 0x29d   : > { %2488 = vmatpush3.bf16.msra.mxu1 %v2715_v61 }
 0x29e   : > { %2501 = vmatprep.subr.bf16.mxu1 %v3131_v0 }
 0x2a0   : > { %2474 = vmatmul.mubr.msk.bf16.gmra.mxu1 %vm585_vm1, %v1201_v63 }
 0x2a1   : > { %2489 = vmatprep.mubr.msk.bf16.mxu1 %vm3132_vm0, %v3131_v0 }
 0x2a8   : > { %2490 = vmatmul.mubr.msk.bf16.vlgmr.msra.gmra.mxu1 %vm585_vm1, %v3441_v5  ;;  %v1988_v5 = vpop.f32.mrf.mxu0 }
 0x2a9   : > { %2502 = vmatpush3.bf16.msra.mxu1 %v2716_v1  ;;  %2505 = vmatprep.mubr.msk.bf16.mxu1 %vm3132_vm0, %v3131_v0  ;;  %v3615_v61 = vadd.f32 %v2318_v52, %v1988_v5  ;;  %v2309_v5 = vld [vmem:[%s3740_s9 + $0x5] ss:$0 sm:$0xff] }
 0x2aa   : > { %2503 = vmatprep.subr.bf16.mxu1 %v3131_v0  ;;  %v2531_v6 = vpop.f32.mrf.mxu0 }
 0x2ac   : > { %v1991_v7 = vpop.f32.mrf.mxu0 }
 0x2ad   : > { %2504 = vmatpush3.bf16.msra.mxu1 %v2717_v2 }
 0x2ae   : > { %2517 = vmatprep.subr.bf16.mxu1 %v3131_v0  ;;  %v2532_v8 = vpop.f32.mrf.mxu0 }
 0x2af   : > { %v2322_v8 = vmul.f32 -1.702, %v3615_v61 }
 0x2b0   : > { %2506 = vmatmul.mubr.msk.bf16.vlgmr.msra.gmra.mxu1 %vm585_vm1, %v3462_v12 }
 0x2b1   : > { %2518 = vmatpush3.bf16.msra.mxu1 %v2718_v3  ;;  %2521 = vmatprep.mubr.msk.bf16.mxu1 %vm3132_vm0, %v3131_v0 }
 0x2b2   : > { %2519 = vmatprep.subr.bf16.mxu1 %v3131_v0  ;;  %v2265_v0 = vld [vmem:[%s3740_s9] ss:$0 sm:$0xff] }
 0x2b3   : > { %v3585_v30 = vadd.f32 %v2265_v0, %v3537_v36 }
 0x2b5   : > { %2520 = vmatpush3.bf16.msra.mxu1 %v2719_v4  ;;  %v2269_v43 = vmul.f32 -1.702, %v3585_v30 }
 0x2b7   : > { %v1421_v53 = vmul.f32 1.442695, %v2269_v43 }
 0x2b8   : > { %2522 = vmatmul.mubr.msk.bf16.vlgmr.msra.gmra.mxu1 %vm585_vm1, %v3480_v19 }
 0x2b9   : > { %2724 = vpow2.f32 %v1421_v53 }
 0x2ba   : > { %2726 = vpow2.f32 %v1610_v57 }
 0x2bb   : > { %2728 = vpow2.f32 %v1806_v60 }
 0x358   : > { %v2471_v9 = vpop.f32.mrf.mxu1 }
 0x359   : > { %v1296_v16 = vmul.f32 0.35355338, %v2471_v9 }
 0x35a   : > { %v1264_v10 = vpop.f32.mrf.mxu1 }
 0x35b   : > { %v1294_v18 = vmul.f32 0.35355338, %v1264_v10  ;;  %v1303_v26 = vsel %vm585_vm1, %v1296_v16, -inf }
 0x35c   : > { %v2472_v11 = vpop.f32.mrf.mxu1 }
 0x35d   : > { %v1297_v27 = vmul.f32 0.35355338, %v2472_v11  ;;  %v1301_v34 = vsel %vm585_vm1, %v1294_v18, -inf }
 0x35e   : > { %v1267_v13 = vpop.f32.mrf.mxu1 }
 0x35f   : > { %v1295_v20 = vmul.f32 0.35355338, %v1267_v13  ;;  %v1304_v40 = vsel %vm585_vm1, %v1297_v27, -inf }
 0x360   : > { %v2475_v12 = vpop.f32.mrf.mxu1 }
 0x361   : > { %v3564_v14 = vmul.f32 0.35355338, %v2475_v12  ;;  %v1302_v35 = vsel %vm585_vm1, %v1295_v20, -inf }
 0x362   : > { %v1280_v15 = vpop.f32.mrf.mxu1 }
 0x363   : > { %v3566_v17 = vmul.f32 0.35355338, %v1280_v15  ;;  %v1309_v21 = vsel %vm585_vm1, %v3564_v14, -inf }
 0x364   : > { %v2476_v19 = vpop.f32.mrf.mxu1  ;;  %v1310_v31 = vmax.f32 %v1303_v26, %v1309_v21 }
 0x365   : > { %v1305_v28 = vsel %vm585_vm1, %v3566_v17, -inf  ;;  %v1996_v19 = vmul.f32 1.442695, %v2322_v8 }
 0x366   : > { %v1283_v25 = vpop.f32.mrf.mxu1  ;;  %v1306_v36 = vmax.f32 %v1301_v34, %v1305_v28  ;;  %v1312_v45 = vmax.f32 %v1310_v31, %v1304_v40  ;;  %v2725_v28 = vpop.eup %2724 }
 0x367   : > { %v3582_v29 = vmul.f32 0.35355338, %v1283_v25 }
 0x368   : > { %v1504_v32 = vpop.f32.mrf.mxu1 }
 0x369   : > { %v1307_v37 = vsel %vm585_vm1, %v3582_v29, -inf  ;;  %v3602_v47 = vadd.f32 %v2273_v38, %v1504_v32 }
 0x36a   : > { %v1308_v41 = vmax.f32 %v1302_v35, %v1307_v37  ;;  %v2491_v42 = vpop.f32.mrf.mxu1  ;;  %v1423_v37 = vadd.f32 1.0, %v2725_v28 }
 0x36b   : > { %v2277_v55 = vmul.f32 -1.702, %v3602_v47 }
 0x36c   : > { %v1311_v46 = vmax.f32 %v1306_v36, %v1308_v41  ;;  %v1507_v48 = vpop.f32.mrf.mxu1 }
 0x36d   : > { %v1512_v2 = vmul.f32 1.442695, %v2277_v55 }
 0x36e   : > { %v1313_v22 = vmax.f32 %v1311_v46, %v1312_v45  ;;  %v2492_v51 = vpop.f32.mrf.mxu1 }
 0x370   : > { %v1314_v54 = vsub.f32 %v1294_v18, %v1313_v22  ;;  %v1700_v56 = vpop.f32.mrf.mxu1  ;;  %v1316_v58 = vsub.f32 %v1296_v16, %v1313_v22  ;;  %v1315_v1 = vsub.f32 %v1295_v20, %v1313_v22  ;;  %v1317_v6 = vsub.f32 %v1297_v27, %v1313_v22 }
 0x371   : > { %v3613_v59 = vadd.f32 %v2291_v44, %v1700_v56  ;;  %v1318_v11 = vsub.f32 %v3566_v17, %v1313_v22  ;;  %v1319_v15 = vsub.f32 %v3582_v29, %v1313_v22  ;;  %v1320_v20 = vsub.f32 %v3564_v14, %v1313_v22  ;;  %v2727_v29 = vpop.eup %2726 }
 0x372   : > { %v2507_v62 = vpop.f32.mrf.mxu1  ;;  %v1321_v63 = vmul.f32 1.442695, %v1314_v54  ;;  %v1325_v7 = vmul.f32 1.442695, %v1316_v58  ;;  %v1323_v13 = vmul.f32 1.442695, %v1315_v1  ;;  %v2729_v31 = vpop.eup %2728 }
 0x373   : > { %v2295_v3 = vmul.f32 -1.702, %v3613_v59  ;;  %v1327_v16 = vmul.f32 1.442695, %v1317_v6  ;;  %v1329_v21 = vmul.f32 1.442695, %v1318_v11 }
 0x374   : > { %v1703_v4 = vpop.f32.mrf.mxu1  ;;  %2730 = vpow2.f32 %v1321_v63  ;;  %v1331_v24 = vmul.f32 1.442695, %v1319_v15  ;;  %v1333_v27 = vmul.f32 1.442695, %v1320_v20  ;;  %v1808_v42 = vadd.f32 1.0, %v2729_v31 }
 0x375   : > { %v1708_v9 = vmul.f32 1.442695, %v2295_v3  ;;  %2732 = vpow2.f32 %v1512_v2  ;;  %v1612_v45 = vadd.f32 1.0, %v2727_v29  ;;  %v2270_v15 = vld [vmem:[%s3741_s10] ss:$0 sm:$0xff] }
 0x376   : > { %v2508_v10 = vpop.f32.mrf.mxu1  ;;  %2734 = vpow2.f32 %v1325_v7 }
 0x377   : > { %2736 = vpow2.f32 %v1708_v9 }
 0x378   : > { %v1891_v12 = vpop.f32.mrf.mxu1  ;;  %2738 = vpow2.f32 %v1323_v13  ;;  %v2279_v13 = vld [vmem:[%s3741_s10 + $0x1] ss:$0 sm:$0xff] }
 0x379   : > { %v3624_v0 = vadd.f32 %v2309_v5, %v1891_v12  ;;  %2740 = vpow2.f32 %v1327_v16  ;;  %v2315_v12 = vld [vmem:[%s3741_s10 + $0x5] ss:$0 sm:$0xff]  ;;  %v2316_v16 = vld [vmem:[#allocation17 + $0x5] ss:$0 sm:$0xff] }
 0x37a   : > { %v2523_v18 = vpop.f32.mrf.mxu1  ;;  %2742 = vpow2.f32 %v1996_v19 }
 0x37b   : > { %v2313_v23 = vmul.f32 -1.702, %v3624_v0  ;;  %2744 = vpow2.f32 %v1329_v21  ;;  %v2288_v18 = vld [vmem:[%s3741_s10 + $0x2] ss:$0 sm:$0xff] }
 0x37c   : > { %v1894_v17 = vpop.f32.mrf.mxu1 }
 0x37d   : > { %v1899_v25 = vmul.f32 1.442695, %v2313_v23 }
 0x37e   : > { %v2524_v26 = vpop.f32.mrf.mxu1 }
 0x37f   : > { %2746 = vpow2.f32 %v1899_v25  ;;  %v2297_v25 = vld [vmem:[%s3741_s10 + $0x3] ss:$0 sm:$0xff]  ;;  %v2271_v26 = vld [vmem:[#allocation17] ss:$0 sm:$0xff] }
 0x380   : > { %2748 = vpow2.f32 %v1331_v24 }
 0x381   : > { %2750 = vpow2.f32 %v1333_v27  ;;  %v3628_v32 = vpop.eup %2730 }
 0x382   : > { %v2733_v14 = vpop.eup %2732  ;;  %v1335_v38 = vsel %vm585_vm1, %v3628_v32, 0.0  ;;  %2752 = vrcp.f32 %v1423_v37 }
 0x383   : > { %v3630_v34 = vpop.eup %2734  ;;  %v1514_v41 = vadd.f32 1.0, %v2733_v14 }
 0x384   : > { %v2737_v35 = vpop.eup %2736  ;;  %v1338_v50 = vsel %vm585_vm1, %v3630_v34, 0.0 }
 0x385   : > { %v3634_v36 = vpop.eup %2738  ;;  %v1710_v49 = vadd.f32 1.0, %v2737_v35  ;;  %2754 = vrcp.f32 %v1514_v41 }
 0x386   : > { %v1336_v40 = vsel %vm585_vm1, %v3634_v36, 0.0  ;;  %v3638_v43 = vpop.eup %2740  ;;  %2756 = vrcp.f32 %v1808_v42 }
 0x387   : > { %v1337_v46 = vadd.f32 %v1336_v40, %v1335_v38  ;;  %v2743_v48 = vpop.eup %2742  ;;  %v1340_v52 = vsel %vm585_vm1, %v3638_v43, 0.0  ;;  %2758 = vrcp.f32 %v1612_v45  ;;  %v2289_v40 = vld [vmem:[#allocation17 + $0x2] ss:$0 sm:$0xff]  ;;  %v2298_v45 = vld [vmem:[#allocation17 + $0x3] ss:$0 sm:$0xff] }
 0x388   : > { %v3642_v22 = vpop.eup %2744  ;;  %v1998_v56 = vadd.f32 1.0, %v2743_v48  ;;  %2760 = vrcp.f32 %v1710_v49 }
 0x389   : > { %v1339_v51 = vadd.f32 %v1338_v50, %v1337_v46  ;;  %v1342_v57 = vsel %vm585_vm1, %v3642_v22, 0.0 }
 0x38b   : > { %v1341_v55 = vadd.f32 %v1340_v52, %v1339_v51 }
 0x38c   : > { %v2747_v44 = vpop.eup %2746 }
 0x38d   : > { %v2749_v53 = vpop.eup %2748  ;;  %v1901_v54 = vadd.f32 1.0, %v2747_v44  ;;  %v1343_v60 = vadd.f32 %v1342_v57, %v1341_v55  ;;  %v2325_v55 = vld [vmem:[#allocation17 + $0x6] ss:$0 sm:$0xff] }
 0x38e   : > { %v3648_v58 = vpop.eup %2750  ;;  %v1344_v62 = vsel %vm585_vm1, %v2749_v53, 0.0 }
 0x38f   : > { %2762 = vrcp.f32 %v1901_v54  ;;  %v1345_v63 = vadd.f32 %v1344_v62, %v1343_v60  ;;  %v1346_v1 = vsel %vm585_vm1, %v3648_v58, 0.0  ;;  %v2753_v3 = vpop.eup %2752 }
 0x390   : > { %2764 = vrcp.f32 %v1998_v56  ;;  %v1426_v5 = vmul.f32 %v2753_v3, %v3585_v30 }
 0x391   : > { %v1347_v2 = vadd.f32 %v1346_v1, %v1345_v63 }
 0x392   : > { %v2755_v4 = vpop.eup %2754  ;;  %v1434_v17 = vmul.f32 %v2270_v15, %v1426_v5 }
 0x393   : > { %2766 = vrcp.f32 %v1347_v2  ;;  %v2757_v6 = vpop.eup %2756  ;;  %v1517_v9 = vmul.f32 %v2755_v4, %v3602_v47  ;;  %v2306_v47 = vld [vmem:[%s3741_s10 + $0x4] ss:$0 sm:$0xff] }
 0x394   : > { %v2759_v7 = vpop.eup %2758  ;;  %v1811_v11 = vmul.f32 %v2757_v6, %v3598_v39  ;;  %v1442_v41 = vadd.f32 %v2271_v26, %v1434_v17 }
 0x395   : > { %v2761_v8 = vpop.eup %2760  ;;  %v1615_v39 = vmul.f32 %v2759_v7, %v3588_v33  ;;  %v1526_v20 = vmul.f32 %v2279_v13, %v1517_v9  ;;  %v2307_v33 = vld [vmem:[#allocation17 + $0x4] ss:$0 sm:$0xff] }
 0x396   : > { %v1713_v21 = vmul.f32 %v2761_v8, %v3613_v59  ;;  %v1820_v24 = vmul.f32 %v2306_v47, %v1811_v11  ;;  %v2324_v59 = vld [vmem:[%s3741_s10 + $0x6] ss:$0 sm:$0xff] }
 0x397   : > { %v1624_v29 = vmul.f32 %v2288_v18, %v1615_v39 }
 0x398   : > { %v1722_v14 = vmul.f32 %v2297_v25, %v1713_v21  ;;  %v1829_v42 = vadd.f32 %v2307_v33, %v1820_v24 }
 0x39c   : > { %v2763_v10 = vpop.eup %2762 }
 0x39d   : > { %v1904_v30 = vmul.f32 %v2763_v10, %v3624_v0  ;;  %v2765_v19 = vpop.eup %2764  ;;  %v2280_v0 = vld [vmem:[#allocation17 + $0x1] ss:$0 sm:$0xff] }
 0x39e   : > { %v2001_v31 = vmul.f32 %v2765_v19, %v3615_v61  ;;  %v1535_v37 = vadd.f32 %v2280_v0, %v1526_v20 }
 0x39f   : > { %v1913_v23 = vmul.f32 %v2315_v12, %v1904_v30 }
 0x3a0   : > { %v2767_v28 = vpop.eup %2766  ;;  %v2010_v54 = vmul.f32 %v2324_v59, %v2001_v31 }
 0x3a1   : > { %v1922_v27 = vadd.f32 %v2316_v16, %v1913_v23  ;;  %v1350_v35 = vmul.f32 %v2767_v28, %v3634_v36  ;;  %v1354_v38 = vmul.f32 %v2767_v28, %v2749_v53  ;;  %v1349_v46 = vmul.f32 %v2767_v28, %v3628_v32 }
 0x3a2   : > { %v1353_v48 = vmul.f32 %v2767_v28, %v3642_v22  ;;  %v1351_v50 = vmul.f32 %v2767_v28, %v3630_v34  ;;  %v1352_v51 = vmul.f32 %v2767_v28, %v3638_v43  ;;  %v1633_v36 = vadd.f32 %v2289_v40, %v1624_v29 }
 0x3a3   : > { %v1536_v49 = vmul.f32 %v1535_v37, %v1350_v35  ;;  %v1923_v61 = vmul.f32 %v1922_v27, %v1354_v38  ;;  %v1443_v44 = vmul.f32 %v1442_v41, %v1349_v46  ;;  %v1731_v53 = vadd.f32 %v2298_v45, %v1722_v14 }
 0x3a4   : > { %v1830_v52 = vmul.f32 %v1829_v42, %v1353_v48  ;;  %v1634_v32 = vmul.f32 %v1633_v36, %v1351_v50  ;;  %v1355_v34 = vmul.f32 %v2767_v28, %v3648_v58  ;;  %v2019_v43 = vadd.f32 %v2325_v55, %v2010_v54 }
 0x3a5   : > { %1538 = vrot.lane.b32.xlu0 %v1536_v49, %s3133_s17  ;;  %1925 = vrot.lane.b32.xlu1 %v1923_v61, %s3133_s17  ;;  %1444 = vst.msk [vmem:[%s555_s1] sm:$0xff] %vm585_vm1, %v1443_v44  ;;  %v1732_v22 = vmul.f32 %v1731_v53, %v1352_v51 }
 0x3a6   : > { %1831 = vst.msk [vmem:[%s555_s1 + $0x8] sm:$0xff] %vm585_vm1, %v1830_v52  ;;  %v2020_v56 = vmul.f32 %v2019_v43, %v1355_v34 }
 0x3a9   : > { %1636 = vrot.lane.b32.xlu0 %v1634_v32, %s3134_s2  ;;  %1734 = vrot.lane.b32.xlu1 %v1732_v22, %s3135_s3 }
 0x3ad   : > { %2022 = vrot.lane.b32.xlu0 %v2020_v56, %s3134_s2 }
 0x417   : > { %v1539_v57 = vpop.permute.xlu0 %1538  ;;  %v1926_v60 = vpop.permute.xlu1 %1925 }
 0x418   : > { %1542 = vst.msk [vmem:[%s555_s1] sm:$0xff] %vm1541_vm2, %v1539_v57  ;;  %1928 = vst.msk [vmem:[%s555_s1 + $0x8] sm:$0xff] %vm1541_vm2, %v1926_v60 }
 0x41b   : > { %v1637_v62 = vpop.permute.xlu0 %1636  ;;  %v1735_v63 = vpop.permute.xlu1 %1734 }
 0x41c   : > { %1640 = vst.msk [vmem:[%s555_s1] sm:$0xff] %vm1639_vm3, %v1637_v62 }
 0x41d   : > { %1738 = vst.msk [vmem:[%s555_s1] sm:$0xff] %vm1737_vm4, %v1735_v63 }
 0x41f   : > { %v2023_v58 = vpop.permute.xlu0 %2022 }
 0x420   : > { %2025 = vst.msk [vmem:[%s555_s1 + $0x8] sm:$0xff] %vm1639_vm3, %v2023_v58 }
 0x421   : > { %3043 = shalt.err (!%p3040_p4)
}
 0x422   : > { %s3044_s29 = scalar_lea.hbm %s3694_s14, 256  ;;  %s3048_s1 = scalar_lea.hbm %s3787_s15, 512 }
 0x423   : > { %p3045_p10 = scmp.ne.s32.totalorder %s3694_s14, %s3044_s29  ;;  %p3049_p13 = scmp.lt.s32.totalorder %s3694_s14, %s3787_s15 }
 0x424   : > { %p3050_p2 = scmp.lt.s32.totalorder %s3048_s1, %s3044_s29 }
 0x425   : > { %p3046_p11 = pnand %p3045_p10, %p3788_p3 }
 0x426   : > { %p3051_p5 = por %p3050_p2, %p3049_p13 }
 0x427   : > { %p3047_p12 = pneg %p3046_p11 }
 0x429   : > { %p3052_p1 = pnand %p3051_p5, %p3047_p12 }
 0x42b   : > { %3055 = shalt.err (!%p3052_p1)
}
 0x42c   : > { %2573 = dma.vmem_to_hbm [thread:$0]  (%p3788_p3), %s2042_s19, 256, %s3694_s14, %s2027_s12  }
 0x42d PF: > { %s2053_s28 = sand.u32 1, %s3102_s21   ;;  %p3789_p7 = scmp.ne.s32.totalorder %s3772_s16, 0 }
 0x42e   : > { %p3790_p0 = scmp.ge.s32.totalorder %s3114_s24, 2  ;;  %s2054_s18 = scalar_lea.sflag [#allocation4], %s2053_s28 }
 0x430   : > { %p2608_p6 = pnand %p3790_p0, %p3789_p7 }
 0x432   : > { %p2609_p9 = pneg %p2608_p6 }
 0x434   : > { %3097 = dma.done.wait (%p2609_p9), %s2054_s18, 256  }
 0x435   : > { %3099 = vsyncadd (%p2609_p9), %s2054_s18, 4294967040  ;;  %p30_p8 = scmp.ge.s32.totalorder %s3334_s26, 4   ;;  %s3791_s21 = smov %s3106_s22 }
 0x436   : > { %s3792_s22 = smov %s3110_s23  ;;  %s3793_s23 = smov %s3346_s25 }
 0x437   : > { %s3794_s24 = smov %s3334_s26  ;;  %32 = sbr.rel (!%p30_p8) target bundleno = 18 (0x12), region = 179 }
 0x43c   :  { %2059 = vsyncpa [#allocation3], 1 }
 0x43d   :  { %2061 = vsyncpa [#allocation3 + $0x1], 1 }
 0x43e   :  { %2062 = vsyncpa [#allocation6], 1 }
 0x43f   :  { %2063 = vsyncpa [#allocation9], 1 }
 0x440   :  { %2064 = vsyncpa [#allocation12], 1 }
 0x441   :  { %2065 = vsyncpa [#allocation15], 1 }
 0x442   :  { %2066 = vsyncpa [#allocation18], 1 }
 0x443   :  { %2067 = vsyncpa [#allocation4], 1 }
 0x444   :  { %2069 = vsyncpa [#allocation4 + $0x1], 1 }

</bundles_post_ra>
